<compile_context>
chip_gen: v7x
topology: tpu7x:2x2x1
jax: 0.10.0
libtpu: 0.0.40
codegen_flags: <defaults>
</compile_context>

<pallas_src>
import functools

import jax
import jax.numpy as jnp
import numpy as np
from jax import lax
from jax.experimental import pallas as pl
from jax.experimental.pallas import tpu as pltpu


def _cross_attn_kernel(x_ref, c_ref, wq_ref, wk_ref, wv_ref, wo_ref, bo_ref,
                       o_ref, k_scr, v_scr, attn_scr, *, heads, dim_head):
    """One (batch b, Sq-tile i) grid step."""
    dh = dim_head
    cdt = x_ref.dtype                    # MXU operand dtype (bf16 in prod)

    # ---- per-batch K/V projection, hoisted out of the Sq-tile axis --------
    @pl.when(pl.program_id(1) == 0)
    def _project_kv():
        c = c_ref[0]                                              # (Sk, Dc)
        k_scr[...] = jnp.dot(c, wk_ref[...],
                             preferred_element_type=jnp.float32).astype(cdt)
        v_scr[...] = jnp.dot(c, wv_ref[...],
                             preferred_element_type=jnp.float32).astype(cdt)

    # ---- per-tile Q projection (softmax scale folded into Wq) -------------
    x = x_ref[0]                                                  # (Sq_t, Dq)
    q = jnp.dot(x, wq_ref[...],
                preferred_element_type=jnp.float32).astype(cdt)   # (Sq_t, H*dh)

    # ---- per-head attention, statically unrolled over H -------------------
    for h in range(heads):
        qh = q[:, h * dh:(h + 1) * dh]                            # (Sq_t, dh)
        kh = k_scr[:, h * dh:(h + 1) * dh]                        # (Sk,  dh)
        vh = v_scr[:, h * dh:(h + 1) * dh]                        # (Sk,  dh)

        # scores = (scale*q) @ k^T ; contract last dims, no explicit k.T
        s = lax.dot_general(qh, kh, (((1,), (1,)), ((), ())),
                            preferred_element_type=jnp.float32)   # (Sq_t, Sk)
        s = s - jnp.max(s, axis=-1, keepdims=True)
        p = jnp.exp(s)
        denom = jnp.sum(p, axis=-1, keepdims=True)                # (Sq_t, 1)

        # PV on unnormalized probabilities; normalize the small (Sq_t, dh)
        # result afterwards (Sq_t*dh multiplies instead of Sq_t*Sk).
        ho = jnp.dot(p.astype(cdt), vh,
                     preferred_element_type=jnp.float32)          # (Sq_t, dh)
        ho = ho * pl.reciprocal(denom, approx=True)
        attn_scr[:, h * dh:(h + 1) * dh] = ho.astype(cdt)

    # ---- single wide output projection + bias ------------------------------
    out = jnp.dot(attn_scr[...], wo_ref[...],
                  preferred_element_type=jnp.float32) + bo_ref[...]  # (Sq_t, Dq)
    o_ref[0] = out.astype(o_ref.dtype)


def _tpu_vmem_capacity_bytes(default=64 * 1024 * 1024):
    try:
        info = pltpu.get_tpu_info()
        cap = getattr(info, "vmem_capacity_bytes", None)
        return int(cap) if cap else default
    except Exception:
        return default


def _build_call(B, Sq, Sk, Dq, Dc, inner, sq_block, dtype, heads, dim_head,
                vmem_limit, weight_mode):
    n_sq = Sq // sq_block

    def wspec(shape):
        idx = lambda b, i, _shape=shape: (0,) * len(_shape)
        if weight_mode is None:
            return pl.BlockSpec(shape, idx)
        return pl.BlockSpec(shape, idx, pipeline_mode=weight_mode)

    kernel = functools.partial(_cross_attn_kernel, heads=heads,
                               dim_head=dim_head)

    return pl.pallas_call(
        kernel,
        out_shape=jax.ShapeDtypeStruct((B, Sq, Dq), dtype),
        grid_spec=pltpu.PrefetchScalarGridSpec(
            num_scalar_prefetch=0,
            grid=(B, n_sq),
            in_specs=[
                pl.BlockSpec((1, sq_block, Dq), lambda b, i: (b, i, 0)),  # x tile
                pl.BlockSpec((1, Sk, Dc), lambda b, i: (b, 0, 0)),        # context
                wspec((Dq, inner)),      # Wq * scale   (resident)
                wspec((Dc, inner)),      # Wk           (resident)
                wspec((Dc, inner)),      # Wv           (resident)
                wspec((inner, Dq)),      # Wo           (resident)
                wspec((1, Dq)),          # out bias f32 (resident)
            ],
            out_specs=pl.BlockSpec((1, sq_block, Dq), lambda b, i: (b, i, 0)),
            scratch_shapes=[
                pltpu.VMEM((Sk, inner), dtype),        # K  (per batch, persistent)
                pltpu.VMEM((Sk, inner), dtype),        # V  (per batch, persistent)
                pltpu.VMEM((sq_block, inner), dtype),  # per-tile head outputs
            ],
        ),
        compiler_params=pltpu.CompilerParams(
            # Batch tiles are independent (megacore-shardable); the Sq axis
            # must stay sequential because it reuses the per-batch K/V scratch.
            dimension_semantics=("parallel", "arbitrary"),
            vmem_limit_bytes=vmem_limit),
    )


def cross_attention(hidden_states, context=None, wq=None, wk=None, wv=None,
                    wo=None, bo=None, *, heads, dim_head, sq_block=None,
                    compute_dtype=None):
    """hidden_states: (B, Sq, Dq); context: (B, Sk, Dc) or None (self-attn).
    wq: (Dq, H*dh), wk/wv: (Dc, H*dh), wo: (H*dh, Dq), bo: (Dq,)."""
    if context is None:
        context = hidden_states
    if compute_dtype is not None:          # production: pass jnp.bfloat16
        hidden_states = hidden_states.astype(compute_dtype)
        context = context.astype(compute_dtype)

    B, Sq, Dq = hidden_states.shape
    Bc, Sk, Dc = context.shape
    assert Bc == B
    inner = heads * dim_head
    scale = dim_head ** (-0.5)
    dtype = hidden_states.dtype

    vmem_cap = _tpu_vmem_capacity_bytes()
    vmem_limit = (vmem_cap // 4) * 3       # ~48 MiB on v7x, ~96 MiB on v5e/v6e

    if sq_block is None:
        heavy = (Dq >= 1024) or (inner >= 1024) or (dtype == jnp.float32)
        cap_rows = 512 if (vmem_cap <= 64 * 1024 * 1024 and heavy) else 1024
        sq_block = min(Sq, cap_rows)
    sq_block = min(sq_block, Sq)
    # TODO(synk): ragged last Sq tile not supported (DDPM UNet spatial sizes
    # are powers of two, so Sq always divides cleanly here).
    assert Sq % sq_block == 0 and (sq_block == Sq or sq_block % 8 == 0)

    # Host-side weight prep: fold softmax scale into Wq, cast to compute dtype.
    wq_s = (wq * scale).astype(dtype)
    wk_c = wk.astype(dtype)
    wv_c = wv.astype(dtype)
    wo_c = wo.astype(dtype)
    bo2 = bo.reshape(1, Dq).astype(jnp.float32)

    args = (hidden_states, context, wq_s, wk_c, wv_c, wo_c, bo2)

    try:
        weight_mode = pl.Buffered(1)   # resident weights: single-buffer them
    except Exception:
        weight_mode = None
    try:
        fn = _build_call(B, Sq, Sk, Dq, Dc, inner, sq_block, dtype,
                         heads, dim_head, vmem_limit, weight_mode)
        return fn(*args)
    except Exception:
        if weight_mode is None:
            raise
        # Fallback: default (double-buffered) weight specs.
        fn = _build_call(B, Sq, Sk, Dq, Dc, inner, sq_block, dtype,
                         heads, dim_head, vmem_limit, None)
        return fn(*args)


def cross_attention_ref(x, ctx, wq, wk, wv, wo, bo, *, heads, dim_head):
    """Pure-JAX reference matching the PyTorch forward semantics."""
    B, Sq, Dq = x.shape
    scale = dim_head ** (-0.5)
    q = x @ wq
    k = ctx @ wk
    v = ctx @ wv

    def split_heads(t):
        b, s, d = t.shape
        return t.reshape(b, s, heads, d // heads).transpose(0, 2, 1, 3)

    q, k, v = split_heads(q), split_heads(k), split_heads(v)
    s = jnp.einsum('bhqd,bhkd->bhqk', q, k) * scale
    p = jax.nn.softmax(s, axis=-1)
    o = jnp.einsum('bhqk,bhkd->bhqd', p, v)
    o = o.transpose(0, 2, 1, 3).reshape(B, Sq, heads * dim_head)
    return o @ wo + bo


if __name__ == "__main__":
    # Small, forward-consistent shapes.  Sq=32 with sq_block=16 forces two
    # Sq tiles per batch, exercising the per-batch K/V scratch reuse path.
    B = 2
    Sq = 32              # query sequence length
    Sk = 8               # context sequence length
    query_dim = 32
    cross_attention_dim = 48
    heads = 4
    dim_head = 8
    inner_dim = heads * dim_head

    key = jax.random.PRNGKey(0)
    kx, kc, k1, k2, k3, k4, k5 = jax.random.split(key, 7)

    hidden_states = jax.random.normal(kx, (B, Sq, query_dim), jnp.float32)
    context = jax.random.normal(kc, (B, Sk, cross_attention_dim), jnp.float32)

    # Parameters stored as (in, out); PyTorch Linear applies x @ W^T.
    wq = 0.05 * jax.random.normal(k1, (query_dim, inner_dim), jnp.float32)
    wk = 0.05 * jax.random.normal(k2, (cross_attention_dim, inner_dim), jnp.float32)
    wv = 0.05 * jax.random.normal(k3, (cross_attention_dim, inner_dim), jnp.float32)
    wo = 0.05 * jax.random.normal(k4, (inner_dim, query_dim), jnp.float32)
    bo = 0.05 * jax.random.normal(k5, (query_dim,), jnp.float32)

    out = cross_attention(hidden_states, context, wq, wk, wv, wo, bo,
                          heads=heads, dim_head=dim_head, sq_block=16)
    out = jax.block_until_ready(out)

    ref = cross_attention_ref(hidden_states, context, wq, wk, wv, wo, bo,
                              heads=heads, dim_head=dim_head)
    # tolerance covers the approximate EUP reciprocal in the softmax (~1e-4 rel)
    np.testing.assert_allclose(np.asarray(out), np.asarray(ref),
                               rtol=1e-3, atol=1e-3)

    # Dropout(p=0.0) in eval mode is the identity — nothing to compute.
    print("KERNEL_OK")
</pallas_src>

<mosaic_0001>
module attributes {stable_mosaic.version = 11 : i64} {
  func.func @_cross_attn_kernel(%arg0: i32, %arg1: i32, %arg2: memref<1x16x32xf32, #tpu.memory_space<vmem>>, %arg3: memref<1x8x48xf32, #tpu.memory_space<vmem>>, %arg4: memref<32x32xf32, #tpu.memory_space<vmem>>, %arg5: memref<48x32xf32, #tpu.memory_space<vmem>>, %arg6: memref<48x32xf32, #tpu.memory_space<vmem>>, %arg7: memref<32x32xf32, #tpu.memory_space<vmem>>, %arg8: memref<1x32xf32, #tpu.memory_space<vmem>>, %arg9: memref<1x16x32xf32, #tpu.memory_space<vmem>>, %arg10: memref<8x32xf32, #tpu.memory_space<vmem>>, %arg11: memref<8x32xf32, #tpu.memory_space<vmem>>, %arg12: memref<16x32xf32, #tpu.memory_space<vmem>>) attributes {dimension_semantics = [#tpu.dimension_semantics<parallel>, #tpu.dimension_semantics<arbitrary>], iteration_bounds = array<i64: 2, 2>, scalar_prefetch = 0 : i64, scratch_operands = 3 : i64, tpu.core_type = #tpu.core_type<tc>, window_params = [{transform_indices = @transform_0, window_bounds = array<i64: 1, 16, 32>}, {transform_indices = @transform_1, window_bounds = array<i64: 1, 8, 48>}, {pipeline_mode = #tpu.pipeline_mode<synchronous>, transform_indices = @transform_2, window_bounds = array<i64: 32, 32>}, {pipeline_mode = #tpu.pipeline_mode<synchronous>, transform_indices = @transform_3, window_bounds = array<i64: 48, 32>}, {pipeline_mode = #tpu.pipeline_mode<synchronous>, transform_indices = @transform_4, window_bounds = array<i64: 48, 32>}, {pipeline_mode = #tpu.pipeline_mode<synchronous>, transform_indices = @transform_5, window_bounds = array<i64: 32, 32>}, {pipeline_mode = #tpu.pipeline_mode<synchronous>, transform_indices = @transform_6, window_bounds = array<i64: 1, 32>}, {transform_indices = @transform_7, window_bounds = array<i64: 1, 16, 32>}]} {
    %c0_i32 = arith.constant 0 : i32
    %0 = arith.cmpi eq, %arg1, %c0_i32 : i32
    %1 = arith.extui %0 : i1 to i32
    %c0_i32_0 = arith.constant 0 : i32
    %2 = arith.cmpi ne, %1, %c0_i32_0 : i32
    scf.if %2 {
      %c0_52 = arith.constant 0 : index
      %c0_53 = arith.constant 0 : index
      %c0_54 = arith.constant 0 : index
      %80 = vector.load %arg3[%c0_52, %c0_53, %c0_54] : memref<1x8x48xf32, #tpu.memory_space<vmem>>, vector<1x8x48xf32>
      %81 = vector.shape_cast %80 : vector<1x8x48xf32> to vector<8x48xf32>
      %c0_55 = arith.constant 0 : index
      %c0_56 = arith.constant 0 : index
      %82 = vector.load %arg5[%c0_55, %c0_56] : memref<48x32xf32, #tpu.memory_space<vmem>>, vector<48x32xf32>
      %cst_57 = arith.constant dense<0.000000e+00> : vector<8x32xf32>
      %83 = tpu.matmul %81, %82, %cst_57 {dimension_numbers = #tpu.dot_dimension_numbers<[1], [0], [0], [1], [0, 0, 1, 1], [], []>} : vector<8x48xf32>, vector<48x32xf32>, vector<8x32xf32> -> vector<8x32xf32>
      %c0_58 = arith.constant 0 : index
      %c0_59 = arith.constant 0 : index
      %84 = vector.load %arg10[%c0_58, %c0_59] : memref<8x32xf32, #tpu.memory_space<vmem>>, vector<8x32xf32>
      tpu.vector_store %arg10[%c0_58, %c0_59], %83 {strides = array<i32>} : memref<8x32xf32, #tpu.memory_space<vmem>>, vector<8x32xf32>,
      %c0_60 = arith.constant 0 : index
      %c0_61 = arith.constant 0 : index
      %85 = vector.load %arg6[%c0_60, %c0_61] : memref<48x32xf32, #tpu.memory_space<vmem>>, vector<48x32xf32>
      %cst_62 = arith.constant dense<0.000000e+00> : vector<8x32xf32>
      %86 = tpu.matmul %81, %85, %cst_62 {dimension_numbers = #tpu.dot_dimension_numbers<[1], [0], [0], [1], [0, 0, 1, 1], [], []>} : vector<8x48xf32>, vector<48x32xf32>, vector<8x32xf32> -> vector<8x32xf32>
      %c0_63 = arith.constant 0 : index
      %c0_64 = arith.constant 0 : index
      %87 = vector.load %arg11[%c0_63, %c0_64] : memref<8x32xf32, #tpu.memory_space<vmem>>, vector<8x32xf32>
      tpu.vector_store %arg11[%c0_63, %c0_64], %86 {strides = array<i32>} : memref<8x32xf32, #tpu.memory_space<vmem>>, vector<8x32xf32>,
    } else {
    }
    %c0 = arith.constant 0 : index
    %c0_1 = arith.constant 0 : index
    %c0_2 = arith.constant 0 : index
    %3 = vector.load %arg2[%c0, %c0_1, %c0_2] : memref<1x16x32xf32, #tpu.memory_space<vmem>>, vector<1x16x32xf32>
    %4 = vector.shape_cast %3 : vector<1x16x32xf32> to vector<16x32xf32>
    %c0_3 = arith.constant 0 : index
    %c0_4 = arith.constant 0 : index
    %5 = vector.load %arg4[%c0_3, %c0_4] : memref<32x32xf32, #tpu.memory_space<vmem>>, vector<32x32xf32>
    %cst = arith.constant dense<0.000000e+00> : vector<16x32xf32>
    %6 = tpu.matmul %4, %5, %cst {dimension_numbers = #tpu.dot_dimension_numbers<[1], [0], [0], [1], [0, 0, 1, 1], [], []>} : vector<16x32xf32>, vector<32x32xf32>, vector<16x32xf32> -> vector<16x32xf32>
    %7 = vector.extract_strided_slice %6 {offsets = [0, 0], sizes = [16, 8], strides = [1, 1]} : vector<16x32xf32> to vector<16x8xf32>
    %c0_5 = arith.constant 0 : index
    %c0_6 = arith.constant 0 : index
    %8 = vector.load %arg10[%c0_5, %c0_6] : memref<8x32xf32, #tpu.memory_space<vmem>>, vector<8x8xf32>
    %c0_7 = arith.constant 0 : index
    %c0_8 = arith.constant 0 : index
    %9 = vector.load %arg11[%c0_7, %c0_8] : memref<8x32xf32, #tpu.memory_space<vmem>>, vector<8x8xf32>
    %cst_9 = arith.constant dense<0.000000e+00> : vector<16x8xf32>
    %10 = tpu.matmul %7, %8, %cst_9 {dimension_numbers = #tpu.dot_dimension_numbers<[1], [1], [0], [0], [0, 0, 1, 0], [], []>} : vector<16x8xf32>, vector<8x8xf32>, vector<16x8xf32> -> vector<16x8xf32>
    %cst_10 = arith.constant dense<0xFF800000> : vector<16xf32>
    %11 = vector.multi_reduction <maximumf>, %10, %cst_10 [1] : vector<16x8xf32> to vector<16xf32>
    %12 = vector.shape_cast %11 : vector<16xf32> to vector<16x1xf32>
    %13 = vector.broadcast %12 : vector<16x1xf32> to vector<16x8xf32>
    %14 = arith.subf %10, %13 : vector<16x8xf32>
    %15 = math.exp %14 : vector<16x8xf32>
    %cst_11 = arith.constant dense<0.000000e+00> : vector<16xf32>
    %16 = vector.multi_reduction <add>, %15, %cst_11 [1] : vector<16x8xf32> to vector<16xf32>
    %17 = vector.shape_cast %16 : vector<16xf32> to vector<16x1xf32>
    %cst_12 = arith.constant dense<0.000000e+00> : vector<16x8xf32>
    %18 = tpu.matmul %15, %9, %cst_12 {dimension_numbers = #tpu.dot_dimension_numbers<[1], [0], [0], [1], [0, 0, 1, 1], [], []>} : vector<16x8xf32>, vector<8x8xf32>, vector<16x8xf32> -> vector<16x8xf32>
    %19 = tpu.reciprocal %17 {approx = true} : vector<16x1xf32> -> vector<16x1xf32>
    %20 = vector.broadcast %19 : vector<16x1xf32> to vector<16x8xf32>
    %21 = arith.mulf %18, %20 : vector<16x8xf32>
    %c0_13 = arith.constant 0 : index
    %c0_14 = arith.constant 0 : index
    %22 = vector.load %arg12[%c0_13, %c0_14] : memref<16x32xf32, #tpu.memory_space<vmem>>, vector<16x8xf32>
    tpu.vector_store %arg12[%c0_13, %c0_14], %21 {strides = array<i32>} : memref<16x32xf32, #tpu.memory_space<vmem>>, vector<16x8xf32>,
    %23 = vector.extract_strided_slice %6 {offsets = [0, 8], sizes = [16, 8], strides = [1, 1]} : vector<16x32xf32> to vector<16x8xf32>
    %c0_15 = arith.constant 0 : index
    %c8 = arith.constant 8 : index
    %24 = vector.load %arg10[%c0_15, %c8] : memref<8x32xf32, #tpu.memory_space<vmem>>, vector<8x8xf32>
    %c0_16 = arith.constant 0 : index
    %c8_17 = arith.constant 8 : index
    %25 = vector.load %arg11[%c0_16, %c8_17] : memref<8x32xf32, #tpu.memory_space<vmem>>, vector<8x8xf32>
    %cst_18 = arith.constant dense<0.000000e+00> : vector<16x8xf32>
    %26 = tpu.matmul %23, %24, %cst_18 {dimension_numbers = #tpu.dot_dimension_numbers<[1], [1], [0], [0], [0, 0, 1, 0], [], []>} : vector<16x8xf32>, vector<8x8xf32>, vector<16x8xf32> -> vector<16x8xf32>
    %cst_19 = arith.constant dense<0xFF800000> : vector<16xf32>
    %27 = vector.multi_reduction <maximumf>, %26, %cst_19 [1] : vector<16x8xf32> to vector<16xf32>
    %28 = vector.shape_cast %27 : vector<16xf32> to vector<16x1xf32>
    %29 = vector.broadcast %28 : vector<16x1xf32> to vector<16x8xf32>
    %30 = arith.subf %26, %29 : vector<16x8xf32>
    %31 = math.exp %30 : vector<16x8xf32>
    %cst_20 = arith.constant dense<0.000000e+00> : vector<16xf32>
    %32 = vector.multi_reduction <add>, %31, %cst_20 [1] : vector<16x8xf32> to vector<16xf32>
    %33 = vector.shape_cast %32 : vector<16xf32> to vector<16x1xf32>
    %cst_21 = arith.constant dense<0.000000e+00> : vector<16x8xf32>
    %34 = tpu.matmul %31, %25, %cst_21 {dimension_numbers = #tpu.dot_dimension_numbers<[1], [0], [0], [1], [0, 0, 1, 1], [], []>} : vector<16x8xf32>, vector<8x8xf32>, vector<16x8xf32> -> vector<16x8xf32>
    %35 = tpu.reciprocal %33 {approx = true} : vector<16x1xf32> -> vector<16x1xf32>
    %36 = vector.broadcast %35 : vector<16x1xf32> to vector<16x8xf32>
    %37 = arith.mulf %34, %36 : vector<16x8xf32>
    %c0_22 = arith.constant 0 : index
    %c8_23 = arith.constant 8 : index
    %38 = vector.load %arg12[%c0_22, %c8_23] : memref<16x32xf32, #tpu.memory_space<vmem>>, vector<16x8xf32>
    tpu.vector_store %arg12[%c0_22, %c8_23], %37 {strides = array<i32>} : memref<16x32xf32, #tpu.memory_space<vmem>>, vector<16x8xf32>,
    %39 = vector.extract_strided_slice %6 {offsets = [0, 16], sizes = [16, 8], strides = [1, 1]} : vector<16x32xf32> to vector<16x8xf32>
    %c0_24 = arith.constant 0 : index
    %c16 = arith.constant 16 : index
    %40 = vector.load %arg10[%c0_24, %c16] : memref<8x32xf32, #tpu.memory_space<vmem>>, vector<8x8xf32>
    %c0_25 = arith.constant 0 : index
    %c16_26 = arith.constant 16 : index
    %41 = vector.load %arg11[%c0_25, %c16_26] : memref<8x32xf32, #tpu.memory_space<vmem>>, vector<8x8xf32>
    %cst_27 = arith.constant dense<0.000000e+00> : vector<16x8xf32>
    %42 = tpu.matmul %39, %40, %cst_27 {dimension_numbers = #tpu.dot_dimension_numbers<[1], [1], [0], [0], [0, 0, 1, 0], [], []>} : vector<16x8xf32>, vector<8x8xf32>, vector<16x8xf32> -> vector<16x8xf32>
    %cst_28 = arith.constant dense<0xFF800000> : vector<16xf32>
    %43 = vector.multi_reduction <maximumf>, %42, %cst_28 [1] : vector<16x8xf32> to vector<16xf32>
    %44 = vector.shape_cast %43 : vector<16xf32> to vector<16x1xf32>
    %45 = vector.broadcast %44 : vector<16x1xf32> to vector<16x8xf32>
    %46 = arith.subf %42, %45 : vector<16x8xf32>
    %47 = math.exp %46 : vector<16x8xf32>
    %cst_29 = arith.constant dense<0.000000e+00> : vector<16xf32>
    %48 = vector.multi_reduction <add>, %47, %cst_29 [1] : vector<16x8xf32> to vector<16xf32>
    %49 = vector.shape_cast %48 : vector<16xf32> to vector<16x1xf32>
    %cst_30 = arith.constant dense<0.000000e+00> : vector<16x8xf32>
    %50 = tpu.matmul %47, %41, %cst_30 {dimension_numbers = #tpu.dot_dimension_numbers<[1], [0], [0], [1], [0, 0, 1, 1], [], []>} : vector<16x8xf32>, vector<8x8xf32>, vector<16x8xf32> -> vector<16x8xf32>
    %51 = tpu.reciprocal %49 {approx = true} : vector<16x1xf32> -> vector<16x1xf32>
    %52 = vector.broadcast %51 : vector<16x1xf32> to vector<16x8xf32>
    %53 = arith.mulf %50, %52 : vector<16x8xf32>
    %c0_31 = arith.constant 0 : index
    %c16_32 = arith.constant 16 : index
    %54 = vector.load %arg12[%c0_31, %c16_32] : memref<16x32xf32, #tpu.memory_space<vmem>>, vector<16x8xf32>
    tpu.vector_store %arg12[%c0_31, %c16_32], %53 {strides = array<i32>} : memref<16x32xf32, #tpu.memory_space<vmem>>, vector<16x8xf32>,
    %55 = vector.extract_strided_slice %6 {offsets = [0, 24], sizes = [16, 8], strides = [1, 1]} : vector<16x32xf32> to vector<16x8xf32>
    %c0_33 = arith.constant 0 : index
    %c24 = arith.constant 24 : index
    %56 = vector.load %arg10[%c0_33, %c24] : memref<8x32xf32, #tpu.memory_space<vmem>>, vector<8x8xf32>
    %c0_34 = arith.constant 0 : index
    %c24_35 = arith.constant 24 : index
    %57 = vector.load %arg11[%c0_34, %c24_35] : memref<8x32xf32, #tpu.memory_space<vmem>>, vector<8x8xf32>
    %cst_36 = arith.constant dense<0.000000e+00> : vector<16x8xf32>
    %58 = tpu.matmul %55, %56, %cst_36 {dimension_numbers = #tpu.dot_dimension_numbers<[1], [1], [0], [0], [0, 0, 1, 0], [], []>} : vector<16x8xf32>, vector<8x8xf32>, vector<16x8xf32> -> vector<16x8xf32>
    %cst_37 = arith.constant dense<0xFF800000> : vector<16xf32>
    %59 = vector.multi_reduction <maximumf>, %58, %cst_37 [1] : vector<16x8xf32> to vector<16xf32>
    %60 = vector.shape_cast %59 : vector<16xf32> to vector<16x1xf32>
    %61 = vector.broadcast %60 : vector<16x1xf32> to vector<16x8xf32>
    %62 = arith.subf %58, %61 : vector<16x8xf32>
    %63 = math.exp %62 : vector<16x8xf32>
    %cst_38 = arith.constant dense<0.000000e+00> : vector<16xf32>
    %64 = vector.multi_reduction <add>, %63, %cst_38 [1] : vector<16x8xf32> to vector<16xf32>
    %65 = vector.shape_cast %64 : vector<16xf32> to vector<16x1xf32>
    %cst_39 = arith.constant dense<0.000000e+00> : vector<16x8xf32>
    %66 = tpu.matmul %63, %57, %cst_39 {dimension_numbers = #tpu.dot_dimension_numbers<[1], [0], [0], [1], [0, 0, 1, 1], [], []>} : vector<16x8xf32>, vector<8x8xf32>, vector<16x8xf32> -> vector<16x8xf32>
    %67 = tpu.reciprocal %65 {approx = true} : vector<16x1xf32> -> vector<16x1xf32>
    %68 = vector.broadcast %67 : vector<16x1xf32> to vector<16x8xf32>
    %69 = arith.mulf %66, %68 : vector<16x8xf32>
    %c0_40 = arith.constant 0 : index
    %c24_41 = arith.constant 24 : index
    %70 = vector.load %arg12[%c0_40, %c24_41] : memref<16x32xf32, #tpu.memory_space<vmem>>, vector<16x8xf32>
    tpu.vector_store %arg12[%c0_40, %c24_41], %69 {strides = array<i32>} : memref<16x32xf32, #tpu.memory_space<vmem>>, vector<16x8xf32>,
    %c0_42 = arith.constant 0 : index
    %c0_43 = arith.constant 0 : index
    %71 = vector.load %arg12[%c0_42, %c0_43] : memref<16x32xf32, #tpu.memory_space<vmem>>, vector<16x32xf32>
    %c0_44 = arith.constant 0 : index
    %c0_45 = arith.constant 0 : index
    %72 = vector.load %arg7[%c0_44, %c0_45] : memref<32x32xf32, #tpu.memory_space<vmem>>, vector<32x32xf32>
    %cst_46 = arith.constant dense<0.000000e+00> : vector<16x32xf32>
    %73 = tpu.matmul %71, %72, %cst_46 {dimension_numbers = #tpu.dot_dimension_numbers<[1], [0], [0], [1], [0, 0, 1, 1], [], []>} : vector<16x32xf32>, vector<32x32xf32>, vector<16x32xf32> -> vector<16x32xf32>
    %c0_47 = arith.constant 0 : index
    %c0_48 = arith.constant 0 : index
    %74 = vector.load %arg8[%c0_47, %c0_48] : memref<1x32xf32, #tpu.memory_space<vmem>>, vector<1x32xf32>
    %75 = vector.broadcast %74 : vector<1x32xf32> to vector<16x32xf32>
    %76 = arith.addf %73, %75 : vector<16x32xf32>
    %c0_49 = arith.constant 0 : index
    %c0_50 = arith.constant 0 : index
    %c0_51 = arith.constant 0 : index
    %77 = vector.load %arg9[%c0_49, %c0_50, %c0_51] : memref<1x16x32xf32, #tpu.memory_space<vmem>>, vector<1x16x32xf32>
    %78 = vector.shape_cast %77 : vector<1x16x32xf32> to vector<16x32xf32>
    %79 = vector.shape_cast %76 : vector<16x32xf32> to vector<1x16x32xf32>
    tpu.vector_store %arg9[%c0_49, %c0_50, %c0_51], %79 {strides = array<i32>} : memref<1x16x32xf32, #tpu.memory_space<vmem>>, vector<1x16x32xf32>,
    return
  }
  func.func @transform_0(%arg0: i32, %arg1: i32) -> (i32, i32, i32) {
    %c0_i32 = arith.constant 0 : i32
    %c0_i32_0 = arith.constant 0 : i32
    return %arg0, %arg1, %c0_i32 : i32, i32, i32
  }
  func.func @transform_1(%arg0: i32, %arg1: i32) -> (i32, i32, i32) {
    %c0_i32 = arith.constant 0 : i32
    %c0_i32_0 = arith.constant 0 : i32
    %c0_i32_1 = arith.constant 0 : i32
    return %arg0, %c0_i32, %c0_i32_0 : i32, i32, i32
  }
  func.func @transform_2(%arg0: i32, %arg1: i32) -> (i32, i32) {
    %c0_i32 = arith.constant 0 : i32
    %c0_i32_0 = arith.constant 0 : i32
    %c0_i32_1 = arith.constant 0 : i32
    return %c0_i32, %c0_i32_0 : i32, i32
  }
  func.func @transform_3(%arg0: i32, %arg1: i32) -> (i32, i32) {
    %c0_i32 = arith.constant 0 : i32
    %c0_i32_0 = arith.constant 0 : i32
    %c0_i32_1 = arith.constant 0 : i32
    return %c0_i32, %c0_i32_0 : i32, i32
  }
  func.func @transform_4(%arg0: i32, %arg1: i32) -> (i32, i32) {
    %c0_i32 = arith.constant 0 : i32
    %c0_i32_0 = arith.constant 0 : i32
    %c0_i32_1 = arith.constant 0 : i32
    return %c0_i32, %c0_i32_0 : i32, i32
  }
  func.func @transform_5(%arg0: i32, %arg1: i32) -> (i32, i32) {
    %c0_i32 = arith.constant 0 : i32
    %c0_i32_0 = arith.constant 0 : i32
    %c0_i32_1 = arith.constant 0 : i32
    return %c0_i32, %c0_i32_0 : i32, i32
  }
  func.func @transform_6(%arg0: i32, %arg1: i32) -> (i32, i32) {
    %c0_i32 = arith.constant 0 : i32
    %c0_i32_0 = arith.constant 0 : i32
    %c0_i32_1 = arith.constant 0 : i32
    return %c0_i32, %c0_i32_0 : i32, i32
  }
  func.func @transform_7(%arg0: i32, %arg1: i32) -> (i32, i32, i32) {
    %c0_i32 = arith.constant 0 : i32
    %c0_i32_0 = arith.constant 0 : i32
    return %arg0, %arg1, %c0_i32 : i32, i32, i32
  }
}

module attributes {stable_mosaic.version = 11 : i64} {
  func.func @_cross_attn_kernel(%arg0: i32, %arg1: i32, %arg2: memref<1x16x32xf32, #tpu.memory_space<vmem>>, %arg3: memref<1x8x48xf32, #tpu.memory_space<vmem>>, %arg4: memref<32x32xf32, #tpu.memory_space<vmem>>, %arg5: memref<48x32xf32, #tpu.memory_space<vmem>>, %arg6: memref<48x32xf32, #tpu.memory_space<vmem>>, %arg7: memref<32x32xf32, #tpu.memory_space<vmem>>, %arg8: memref<1x32xf32, #tpu.memory_space<vmem>>, %arg9: memref<1x16x32xf32, #tpu.memory_space<vmem>>, %arg10: memref<8x32xf32, #tpu.memory_space<vmem>>, %arg11: memref<8x32xf32, #tpu.memory_space<vmem>>, %arg12: memref<16x32xf32, #tpu.memory_space<vmem>>) attributes {dimension_semantics = [#tpu.dimension_semantics<parallel>, #tpu.dimension_semantics<arbitrary>], iteration_bounds = array<i64: 2, 2>, scalar_prefetch = 0 : i64, scratch_operands = 3 : i64, tpu.core_type = #tpu.core_type<tc>, window_params = [{transform_indices = @transform_0, window_bounds = array<i64: 1, 16, 32>}, {transform_indices = @transform_1, window_bounds = array<i64: 1, 8, 48>}, {pipeline_mode = #tpu.pipeline_mode<synchronous>, transform_indices = @transform_2, window_bounds = array<i64: 32, 32>}, {pipeline_mode = #tpu.pipeline_mode<synchronous>, transform_indices = @transform_3, window_bounds = array<i64: 48, 32>}, {pipeline_mode = #tpu.pipeline_mode<synchronous>, transform_indices = @transform_4, window_bounds = array<i64: 48, 32>}, {pipeline_mode = #tpu.pipeline_mode<synchronous>, transform_indices = @transform_5, window_bounds = array<i64: 32, 32>}, {pipeline_mode = #tpu.pipeline_mode<synchronous>, transform_indices = @transform_6, window_bounds = array<i64: 1, 32>}, {transform_indices = @transform_7, window_bounds = array<i64: 1, 16, 32>}]} {
    %c0_i32 = arith.constant 0 : i32
    %0 = arith.cmpi eq, %arg1, %c0_i32 : i32
    %1 = arith.extui %0 : i1 to i32
    %c0_i32_0 = arith.constant 0 : i32
    %2 = arith.cmpi ne, %1, %c0_i32_0 : i32
    scf.if %2 {
      %c0_52 = arith.constant 0 : index
      %c0_53 = arith.constant 0 : index
      %c0_54 = arith.constant 0 : index
      %80 = vector.load %arg3[%c0_52, %c0_53, %c0_54] : memref<1x8x48xf32, #tpu.memory_space<vmem>>, vector<1x8x48xf32>
      %81 = vector.shape_cast %80 : vector<1x8x48xf32> to vector<8x48xf32>
      %c0_55 = arith.constant 0 : index
      %c0_56 = arith.constant 0 : index
      %82 = vector.load %arg5[%c0_55, %c0_56] : memref<48x32xf32, #tpu.memory_space<vmem>>, vector<48x32xf32>
      %cst_57 = arith.constant dense<0.000000e+00> : vector<8x32xf32>
      %83 = tpu.matmul %81, %82, %cst_57 {dimension_numbers = #tpu.dot_dimension_numbers<[1], [0], [0], [1], [0, 0, 1, 1], [], []>} : vector<8x48xf32>, vector<48x32xf32>, vector<8x32xf32> -> vector<8x32xf32>
      %c0_58 = arith.constant 0 : index
      %c0_59 = arith.constant 0 : index
      %84 = vector.load %arg10[%c0_58, %c0_59] : memref<8x32xf32, #tpu.memory_space<vmem>>, vector<8x32xf32>
      tpu.vector_store %arg10[%c0_58, %c0_59], %83 {strides = array<i32>} : memref<8x32xf32, #tpu.memory_space<vmem>>, vector<8x32xf32>,
      %c0_60 = arith.constant 0 : index
      %c0_61 = arith.constant 0 : index
      %85 = vector.load %arg6[%c0_60, %c0_61] : memref<48x32xf32, #tpu.memory_space<vmem>>, vector<48x32xf32>
      %cst_62 = arith.constant dense<0.000000e+00> : vector<8x32xf32>
      %86 = tpu.matmul %81, %85, %cst_62 {dimension_numbers = #tpu.dot_dimension_numbers<[1], [0], [0], [1], [0, 0, 1, 1], [], []>} : vector<8x48xf32>, vector<48x32xf32>, vector<8x32xf32> -> vector<8x32xf32>
      %c0_63 = arith.constant 0 : index
      %c0_64 = arith.constant 0 : index
      %87 = vector.load %arg11[%c0_63, %c0_64] : memref<8x32xf32, #tpu.memory_space<vmem>>, vector<8x32xf32>
      tpu.vector_store %arg11[%c0_63, %c0_64], %86 {strides = array<i32>} : memref<8x32xf32, #tpu.memory_space<vmem>>, vector<8x32xf32>,
    } else {
    }
    %c0 = arith.constant 0 : index
    %c0_1 = arith.constant 0 : index
    %c0_2 = arith.constant 0 : index
    %3 = vector.load %arg2[%c0, %c0_1, %c0_2] : memref<1x16x32xf32, #tpu.memory_space<vmem>>, vector<1x16x32xf32>
    %4 = vector.shape_cast %3 : vector<1x16x32xf32> to vector<16x32xf32>
    %c0_3 = arith.constant 0 : index
    %c0_4 = arith.constant 0 : index
    %5 = vector.load %arg4[%c0_3, %c0_4] : memref<32x32xf32, #tpu.memory_space<vmem>>, vector<32x32xf32>
    %cst = arith.constant dense<0.000000e+00> : vector<16x32xf32>
    %6 = tpu.matmul %4, %5, %cst {dimension_numbers = #tpu.dot_dimension_numbers<[1], [0], [0], [1], [0, 0, 1, 1], [], []>} : vector<16x32xf32>, vector<32x32xf32>, vector<16x32xf32> -> vector<16x32xf32>
    %7 = vector.extract_strided_slice %6 {offsets = [0, 0], sizes = [16, 8], strides = [1, 1]} : vector<16x32xf32> to vector<16x8xf32>
    %c0_5 = arith.constant 0 : index
    %c0_6 = arith.constant 0 : index
    %8 = vector.load %arg10[%c0_5, %c0_6] : memref<8x32xf32, #tpu.memory_space<vmem>>, vector<8x8xf32>
    %c0_7 = arith.constant 0 : index
    %c0_8 = arith.constant 0 : index
    %9 = vector.load %arg11[%c0_7, %c0_8] : memref<8x32xf32, #tpu.memory_space<vmem>>, vector<8x8xf32>
    %cst_9 = arith.constant dense<0.000000e+00> : vector<16x8xf32>
    %10 = tpu.matmul %7, %8, %cst_9 {dimension_numbers = #tpu.dot_dimension_numbers<[1], [1], [0], [0], [0, 0, 1, 0], [], []>} : vector<16x8xf32>, vector<8x8xf32>, vector<16x8xf32> -> vector<16x8xf32>
    %cst_10 = arith.constant dense<0xFF800000> : vector<16xf32>
    %11 = vector.multi_reduction <maximumf>, %10, %cst_10 [1] : vector<16x8xf32> to vector<16xf32>
    %12 = vector.shape_cast %11 : vector<16xf32> to vector<16x1xf32>
    %13 = vector.broadcast %12 : vector<16x1xf32> to vector<16x8xf32>
    %14 = arith.subf %10, %13 : vector<16x8xf32>
    %15 = math.exp %14 : vector<16x8xf32>
    %cst_11 = arith.constant dense<0.000000e+00> : vector<16xf32>
    %16 = vector.multi_reduction <add>, %15, %cst_11 [1] : vector<16x8xf32> to vector<16xf32>
    %17 = vector.shape_cast %16 : vector<16xf32> to vector<16x1xf32>
    %cst_12 = arith.constant dense<0.000000e+00> : vector<16x8xf32>
    %18 = tpu.matmul %15, %9, %cst_12 {dimension_numbers = #tpu.dot_dimension_numbers<[1], [0], [0], [1], [0, 0, 1, 1], [], []>} : vector<16x8xf32>, vector<8x8xf32>, vector<16x8xf32> -> vector<16x8xf32>
    %19 = tpu.reciprocal %17 {approx = true} : vector<16x1xf32> -> vector<16x1xf32>
    %20 = vector.broadcast %19 : vector<16x1xf32> to vector<16x8xf32>
    %21 = arith.mulf %18, %20 : vector<16x8xf32>
    %c0_13 = arith.constant 0 : index
    %c0_14 = arith.constant 0 : index
    %22 = vector.load %arg12[%c0_13, %c0_14] : memref<16x32xf32, #tpu.memory_space<vmem>>, vector<16x8xf32>
    tpu.vector_store %arg12[%c0_13, %c0_14], %21 {strides = array<i32>} : memref<16x32xf32, #tpu.memory_space<vmem>>, vector<16x8xf32>,
    %23 = vector.extract_strided_slice %6 {offsets = [0, 8], sizes = [16, 8], strides = [1, 1]} : vector<16x32xf32> to vector<16x8xf32>
    %c0_15 = arith.constant 0 : index
    %c8 = arith.constant 8 : index
    %24 = vector.load %arg10[%c0_15, %c8] : memref<8x32xf32, #tpu.memory_space<vmem>>, vector<8x8xf32>
    %c0_16 = arith.constant 0 : index
    %c8_17 = arith.constant 8 : index
    %25 = vector.load %arg11[%c0_16, %c8_17] : memref<8x32xf32, #tpu.memory_space<vmem>>, vector<8x8xf32>
    %cst_18 = arith.constant dense<0.000000e+00> : vector<16x8xf32>
    %26 = tpu.matmul %23, %24, %cst_18 {dimension_numbers = #tpu.dot_dimension_numbers<[1], [1], [0], [0], [0, 0, 1, 0], [], []>} : vector<16x8xf32>, vector<8x8xf32>, vector<16x8xf32> -> vector<16x8xf32>
    %cst_19 = arith.constant dense<0xFF800000> : vector<16xf32>
    %27 = vector.multi_reduction <maximumf>, %26, %cst_19 [1] : vector<16x8xf32> to vector<16xf32>
    %28 = vector.shape_cast %27 : vector<16xf32> to vector<16x1xf32>
    %29 = vector.broadcast %28 : vector<16x1xf32> to vector<16x8xf32>
    %30 = arith.subf %26, %29 : vector<16x8xf32>
    %31 = math.exp %30 : vector<16x8xf32>
    %cst_20 = arith.constant dense<0.000000e+00> : vector<16xf32>
    %32 = vector.multi_reduction <add>, %31, %cst_20 [1] : vector<16x8xf32> to vector<16xf32>
    %33 = vector.shape_cast %32 : vector<16xf32> to vector<16x1xf32>
    %cst_21 = arith.constant dense<0.000000e+00> : vector<16x8xf32>
    %34 = tpu.matmul %31, %25, %cst_21 {dimension_numbers = #tpu.dot_dimension_numbers<[1], [0], [0], [1], [0, 0, 1, 1], [], []>} : vector<16x8xf32>, vector<8x8xf32>, vector<16x8xf32> -> vector<16x8xf32>
    %35 = tpu.reciprocal %33 {approx = true} : vector<16x1xf32> -> vector<16x1xf32>
    %36 = vector.broadcast %35 : vector<16x1xf32> to vector<16x8xf32>
    %37 = arith.mulf %34, %36 : vector<16x8xf32>
    %c0_22 = arith.constant 0 : index
    %c8_23 = arith.constant 8 : index
    %38 = vector.load %arg12[%c0_22, %c8_23] : memref<16x32xf32, #tpu.memory_space<vmem>>, vector<16x8xf32>
    tpu.vector_store %arg12[%c0_22, %c8_23], %37 {strides = array<i32>} : memref<16x32xf32, #tpu.memory_space<vmem>>, vector<16x8xf32>,
    %39 = vector.extract_strided_slice %6 {offsets = [0, 16], sizes = [16, 8], strides = [1, 1]} : vector<16x32xf32> to vector<16x8xf32>
    %c0_24 = arith.constant 0 : index
    %c16 = arith.constant 16 : index
    %40 = vector.load %arg10[%c0_24, %c16] : memref<8x32xf32, #tpu.memory_space<vmem>>, vector<8x8xf32>
    %c0_25 = arith.constant 0 : index
    %c16_26 = arith.constant 16 : index
    %41 = vector.load %arg11[%c0_25, %c16_26] : memref<8x32xf32, #tpu.memory_space<vmem>>, vector<8x8xf32>
    %cst_27 = arith.constant dense<0.000000e+00> : vector<16x8xf32>
    %42 = tpu.matmul %39, %40, %cst_27 {dimension_numbers = #tpu.dot_dimension_numbers<[1], [1], [0], [0], [0, 0, 1, 0], [], []>} : vector<16x8xf32>, vector<8x8xf32>, vector<16x8xf32> -> vector<16x8xf32>
    %cst_28 = arith.constant dense<0xFF800000> : vector<16xf32>
    %43 = vector.multi_reduction <maximumf>, %42, %cst_28 [1] : vector<16x8xf32> to vector<16xf32>
    %44 = vector.shape_cast %43 : vector<16xf32> to vector<16x1xf32>
    %45 = vector.broadcast %44 : vector<16x1xf32> to vector<16x8xf32>
    %46 = arith.subf %42, %45 : vector<16x8xf32>
    %47 = math.exp %46 : vector<16x8xf32>
    %cst_29 = arith.constant dense<0.000000e+00> : vector<16xf32>
    %48 = vector.multi_reduction <add>, %47, %cst_29 [1] : vector<16x8xf32> to vector<16xf32>
    %49 = vector.shape_cast %48 : vector<16xf32> to vector<16x1xf32>
    %cst_30 = arith.constant dense<0.000000e+00> : vector<16x8xf32>
    %50 = tpu.matmul %47, %41, %cst_30 {dimension_numbers = #tpu.dot_dimension_numbers<[1], [0], [0], [1], [0, 0, 1, 1], [], []>} : vector<16x8xf32>, vector<8x8xf32>, vector<16x8xf32> -> vector<16x8xf32>
    %51 = tpu.reciprocal %49 {approx = true} : vector<16x1xf32> -> vector<16x1xf32>
    %52 = vector.broadcast %51 : vector<16x1xf32> to vector<16x8xf32>
    %53 = arith.mulf %50, %52 : vector<16x8xf32>
    %c0_31 = arith.constant 0 : index
    %c16_32 = arith.constant 16 : index
    %54 = vector.load %arg12[%c0_31, %c16_32] : memref<16x32xf32, #tpu.memory_space<vmem>>, vector<16x8xf32>
    tpu.vector_store %arg12[%c0_31, %c16_32], %53 {strides = array<i32>} : memref<16x32xf32, #tpu.memory_space<vmem>>, vector<16x8xf32>,
    %55 = vector.extract_strided_slice %6 {offsets = [0, 24], sizes = [16, 8], strides = [1, 1]} : vector<16x32xf32> to vector<16x8xf32>
    %c0_33 = arith.constant 0 : index
    %c24 = arith.constant 24 : index
    %56 = vector.load %arg10[%c0_33, %c24] : memref<8x32xf32, #tpu.memory_space<vmem>>, vector<8x8xf32>
    %c0_34 = arith.constant 0 : index
    %c24_35 = arith.constant 24 : index
    %57 = vector.load %arg11[%c0_34, %c24_35] : memref<8x32xf32, #tpu.memory_space<vmem>>, vector<8x8xf32>
    %cst_36 = arith.constant dense<0.000000e+00> : vector<16x8xf32>
    %58 = tpu.matmul %55, %56, %cst_36 {dimension_numbers = #tpu.dot_dimension_numbers<[1], [1], [0], [0], [0, 0, 1, 0], [], []>} : vector<16x8xf32>, vector<8x8xf32>, vector<16x8xf32> -> vector<16x8xf32>
    %cst_37 = arith.constant dense<0xFF800000> : vector<16xf32>
    %59 = vector.multi_reduction <maximumf>, %58, %cst_37 [1] : vector<16x8xf32> to vector<16xf32>
    %60 = vector.shape_cast %59 : vector<16xf32> to vector<16x1xf32>
    %61 = vector.broadcast %60 : vector<16x1xf32> to vector<16x8xf32>
    %62 = arith.subf %58, %61 : vector<16x8xf32>
    %63 = math.exp %62 : vector<16x8xf32>
    %cst_38 = arith.constant dense<0.000000e+00> : vector<16xf32>
    %64 = vector.multi_reduction <add>, %63, %cst_38 [1] : vector<16x8xf32> to vector<16xf32>
    %65 = vector.shape_cast %64 : vector<16xf32> to vector<16x1xf32>
    %cst_39 = arith.constant dense<0.000000e+00> : vector<16x8xf32>
    %66 = tpu.matmul %63, %57, %cst_39 {dimension_numbers = #tpu.dot_dimension_numbers<[1], [0], [0], [1], [0, 0, 1, 1], [], []>} : vector<16x8xf32>, vector<8x8xf32>, vector<16x8xf32> -> vector<16x8xf32>
    %67 = tpu.reciprocal %65 {approx = true} : vector<16x1xf32> -> vector<16x1xf32>
    %68 = vector.broadcast %67 : vector<16x1xf32> to vector<16x8xf32>
    %69 = arith.mulf %66, %68 : vector<16x8xf32>
    %c0_40 = arith.constant 0 : index
    %c24_41 = arith.constant 24 : index
    %70 = vector.load %arg12[%c0_40, %c24_41] : memref<16x32xf32, #tpu.memory_space<vmem>>, vector<16x8xf32>
    tpu.vector_store %arg12[%c0_40, %c24_41], %69 {strides = array<i32>} : memref<16x32xf32, #tpu.memory_space<vmem>>, vector<16x8xf32>,
    %c0_42 = arith.constant 0 : index
    %c0_43 = arith.constant 0 : index
    %71 = vector.load %arg12[%c0_42, %c0_43] : memref<16x32xf32, #tpu.memory_space<vmem>>, vector<16x32xf32>
    %c0_44 = arith.constant 0 : index
    %c0_45 = arith.constant 0 : index
    %72 = vector.load %arg7[%c0_44, %c0_45] : memref<32x32xf32, #tpu.memory_space<vmem>>, vector<32x32xf32>
    %cst_46 = arith.constant dense<0.000000e+00> : vector<16x32xf32>
    %73 = tpu.matmul %71, %72, %cst_46 {dimension_numbers = #tpu.dot_dimension_numbers<[1], [0], [0], [1], [0, 0, 1, 1], [], []>} : vector<16x32xf32>, vector<32x32xf32>, vector<16x32xf32> -> vector<16x32xf32>
    %c0_47 = arith.constant 0 : index
    %c0_48 = arith.constant 0 : index
    %74 = vector.load %arg8[%c0_47, %c0_48] : memref<1x32xf32, #tpu.memory_space<vmem>>, vector<1x32xf32>
    %75 = vector.broadcast %74 : vector<1x32xf32> to vector<16x32xf32>
    %76 = arith.addf %73, %75 : vector<16x32xf32>
    %c0_49 = arith.constant 0 : index
    %c0_50 = arith.constant 0 : index
    %c0_51 = arith.constant 0 : index
    %77 = vector.load %arg9[%c0_49, %c0_50, %c0_51] : memref<1x16x32xf32, #tpu.memory_space<vmem>>, vector<1x16x32xf32>
    %78 = vector.shape_cast %77 : vector<1x16x32xf32> to vector<16x32xf32>
    %79 = vector.shape_cast %76 : vector<16x32xf32> to vector<1x16x32xf32>
    tpu.vector_store %arg9[%c0_49, %c0_50, %c0_51], %79 {strides = array<i32>} : memref<1x16x32xf32, #tpu.memory_space<vmem>>, vector<1x16x32xf32>,
    return
  }
  func.func @transform_0(%arg0: i32, %arg1: i32) -> (i32, i32, i32) {
    %c0_i32 = arith.constant 0 : i32
    %c0_i32_0 = arith.constant 0 : i32
    return %arg0, %arg1, %c0_i32 : i32, i32, i32
  }
  func.func @transform_1(%arg0: i32, %arg1: i32) -> (i32, i32, i32) {
    %c0_i32 = arith.constant 0 : i32
    %c0_i32_0 = arith.constant 0 : i32
    %c0_i32_1 = arith.constant 0 : i32
    return %arg0, %c0_i32, %c0_i32_0 : i32, i32, i32
  }
  func.func @transform_2(%arg0: i32, %arg1: i32) -> (i32, i32) {
    %c0_i32 = arith.constant 0 : i32
    %c0_i32_0 = arith.constant 0 : i32
    %c0_i32_1 = arith.constant 0 : i32
    return %c0_i32, %c0_i32_0 : i32, i32
  }
  func.func @transform_3(%arg0: i32, %arg1: i32) -> (i32, i32) {
    %c0_i32 = arith.constant 0 : i32
    %c0_i32_0 = arith.constant 0 : i32
    %c0_i32_1 = arith.constant 0 : i32
    return %c0_i32, %c0_i32_0 : i32, i32
  }
  func.func @transform_4(%arg0: i32, %arg1: i32) -> (i32, i32) {
    %c0_i32 = arith.constant 0 : i32
    %c0_i32_0 = arith.constant 0 : i32
    %c0_i32_1 = arith.constant 0 : i32
    return %c0_i32, %c0_i32_0 : i32, i32
  }
  func.func @transform_5(%arg0: i32, %arg1: i32) -> (i32, i32) {
    %c0_i32 = arith.constant 0 : i32
    %c0_i32_0 = arith.constant 0 : i32
    %c0_i32_1 = arith.constant 0 : i32
    return %c0_i32, %c0_i32_0 : i32, i32
  }
  func.func @transform_6(%arg0: i32, %arg1: i32) -> (i32, i32) {
    %c0_i32 = arith.constant 0 : i32
    %c0_i32_0 = arith.constant 0 : i32
    %c0_i32_1 = arith.constant 0 : i32
    return %c0_i32, %c0_i32_0 : i32, i32
  }
  func.func @transform_7(%arg0: i32, %arg1: i32) -> (i32, i32, i32) {
    %c0_i32 = arith.constant 0 : i32
    %c0_i32_0 = arith.constant 0 : i32
    return %arg0, %arg1, %c0_i32 : i32, i32, i32
  }
}

</mosaic_0001>

<bundles_post_ra>
// kernel: tpu_custom_call.1
= control target key start
LH: loop header
LB: loop body
LE: loop exit
PB: predicated region body
PF: predicated region fallthrough
CT: control target
= control target key end

     0   :  { %s2596_s0 = inlined_call_operand.vmem [shape: f32[2,32,32], index: 0, kind: input, shape index: {}]   ;;  %s2597_s1 = inlined_call_operand.hbm [shape: f32[2,8,48], index: 1, kind: input, shape index: {}]   ;;  %s2598_s2 = inlined_call_operand.vmem [shape: f32[32,32], index: 2, kind: input, shape index: {}]   ;;  %s2599_s3 = inlined_call_operand.vmem [shape: f32[48,32], index: 3, kind: input, shape index: {}]   ;;  %s2600_s4 = inlined_call_operand.vmem [shape: f32[48,32], index: 4, kind: input, shape index: {}]   ;;  %s2601_s5 = inlined_call_operand.vmem [shape: f32[32,32], index: 5, kind: input, shape index: {}]   ;;  %s2602_s6 = inlined_call_operand.vmem [shape: f32[1,32], index: 6, kind: input, shape index: {}]   ;;  %s2603_s7 = inlined_call_operand.hbm [shape: f32[2,32,32], index: 7, kind: output, shape index: {}]  }
   0x1   :  { %2613 = sst [smem:[#allocation18_spill]] %s2597_s1 }
   0x2   :  { %2614 = sst [smem:[#allocation19_spill]] %s2603_s7 }
   0x3   :  { %12 = vsyncpa [#allocation6], 0 }
   0x4   :  { %14 = vsyncpa [#allocation6 + $0x1], 0 }
   0x5   :  { %15 = vsyncpa [#allocation7], 0 }
   0x6   :  { %17 = vsyncpa [#allocation7 + $0x1], 0  ;;  %s2202_s24 = smov 0   ;;  %s2204_s25 = smov 0  }
   0x7   :  { %s2206_s26 = smov 0   ;;  %s2208_s27 = smov 0  }
   0x8   :  { %s2210_s28 = smov 0   ;;  %s2212_s29 = smov 0  }
   0x9   :  { %s2214_s30 = smov 0   ;;  %s2216_s8 = smov 0  }
   0xa   :  { %s2218_s9 = smov 0   ;;  %s2220_s10 = smov 0  }
   0xb   :  { %s2222_s11 = smov 0  }
   0xc LB: > { %2615 = sst [smem:[#allocation11_spill]] %s2124_s28  ;;  %s1630_s12 = sadd.s32 4294967295, %s2148_s11   ;;  %s2148_s11 = sphi %s2222_s11, %s23_s11   ;;  %s2144_s10 = sphi %s2220_s10, %s2642_s10   ;;  %s2140_s9 = sphi %s2218_s9, %s2641_s9   ;;  %s2136_s8 = sphi %s2216_s8, %s2640_s8   ;;  %s2132_s30 = sphi %s2214_s30, %s2639_s30   ;;  %s2128_s29 = sphi %s2212_s29, %s2638_s29   ;;  %s2124_s28 = sphi %s2210_s28, %s2637_s28   ;;  %s2120_s27 = sphi %s2208_s27, %s2636_s27   ;;  %s2116_s26 = sphi %s2206_s26, %s2645_s26   ;;  %s2112_s25 = sphi %s2204_s25, %s2644_s25   ;;  %s2108_s24 = sphi %s2202_s24, %s2643_s24  }
   0xd   : > { %2616 = sst [smem:[#allocation12_spill]] %s2128_s29  ;;  %s1631_s13 = sadd.s32 4294967294, %s2148_s11  }
   0xe   : > { %2617 = sst [smem:[#allocation13_spill]] %s2140_s9  ;;  %s32_s14 = sadd.s32 1, %s2140_s9 }
   0xf   : > { %2618 = sst [smem:[#allocation14_spill]] %s2144_s10  ;;  %s35_s15 = sadd.s32 1, %s2144_s10 }
  0x10   : > { %p33_p0 = scmp.ge.s32.totalorder %s32_s14, 2  ;;  %s70_s16 = sadd.s32 1, %s2128_s29 }
  0x11   : > { %p77_p1 = scmp.ne.s32.totalorder %s2128_s29, %s2124_s28  ;;  %p78_p2 = scmp.eq.s32.totalorder %s2148_s11, 0 }
  0x12   : > { %s2647_s14 = smov (%p33_p0, %s32_s14), 0  ;;  %s2649_s15 = smov (!%p33_p0, %s35_s15), %s2144_s10 }
  0x13   : > { %2619 = sst [smem:[#allocation15_spill]] %s2647_s14  ;;  %p2266_p3 = por %p78_p2, %p77_p1 }
  0x14   : > { %p83_p4 = scmp.ne.s32.totalorder %s2124_s28, %s2120_s27  ;;  %p37_p5 = scmp.ge.s32.totalorder %s2649_s15, 2 }
  0x15   : > { %p84_p6 = scmp.eq.s32.totalorder %s1630_s12, 0  ;;  %s199_s18 = ssub.s32 %s2140_s9, %s2647_s14 }
  0x16   : > { %s203_s19 = sadd.s32 1, %s2116_s26  ;;  %s2651_s15 = smov (%p37_p5, %s2649_s15), 0 }
  0x17   : > { %2621 = sst [smem:[#allocation16_spill]] %s2651_s15  ;;  %p2276_p7 = por %p84_p6, %p83_p4 }
  0x18   : > { %p213_p8 = scmp.ne.s32.totalorder %s2116_s26, %s2112_s25  ;;  %s67_s21 = ssub.s32 %s2144_s10, %s2651_s15 }
  0x19   : > { %p214_p9 = scmp.eq.s32.totalorder %s1630_s12, 3  ;;  %p68_p10 = scmp.eq.s32.totalorder %s67_s21, 0 }
  0x1a   : > { %s200_s22 = sor.u32 %s199_s18, %s67_s21  ;;  %p219_p13 = scmp.ne.s32.totalorder %s2112_s25, %s2108_s24 }
  0x1b   : > { %p201_p11 = scmp.eq.s32.totalorder %s200_s22, 0  ;;  %p2284_p12 = por %p214_p9, %p213_p8 }
  0x1c   : > { %s2289_s27 = scalar_select %p68_p10, %s2128_s29, %s70_s16  }
  0x1d   : > { %s2623_s23 = scalar_select %p2284_p12, 1, 0 }
  0x1e   : > { %2624 = sst [smem:[#allocation17_spill]] %s2289_s27  ;;  %p220_p0 = scmp.eq.s32.totalorder %s1631_s13, 3 }
  0x1f   : > { %s2292_s14 = scalar_select %p201_p11, %s2116_s26, %s203_s19  }
  0x20   : > { %p1864_p1 = scmp.lt.s32.totalorder %s2148_s11, 4  ;;  %p2297_p2 = por %p220_p0, %p219_p13 }
  0x21   : > { %s268_s12 = sand.u32 1, %s2128_s29   ;;  %s1635_s21 = sshll.u32 %s2144_s10, 7 }
  0x22   : > { %s2625_s15 = scalar_select %p2297_p2, 1, 0 }
  0x23   : > { %s1634_s18 = sshll.u32 %s268_s12, 3  ;;  %s2626_s1 = sld [smem:[#allocation18_spill]] }
  0x24   : > { %s272_s16 = scalar_lea.vmem [#allocation5], %s1634_s18  ;;  %p2312_p4 = pnand %p1864_p1, %p2266_p3 }
  0x25   : > { %s279_s19 = sshll.u32 %s272_s16, 4  ;;  %s269_s9 = scalar_lea.sflag [#allocation6], %s268_s12  ;;  %s2308_s19 = int_to_ptr.vmem [resolvable:$true] %s279_s19 }
  0x26   : > { %p1998_p9 = pneg %p2312_p4 }
  0x29   : > { %s2306_s7 = scalar_lea.hbm %s2626_s1, %s1635_s21  ;;  %s2001_s17 = scalar_lea.hbm %s2626_s1, 256 }
  0x2a   : > { %s1996_s21 = scalar_lea.hbm %s2306_s7, 128  ;;  %p2002_p3 = scmp.lt.u32.totalorder %s2306_s7, %s2626_s1 }
  0x2b   : > { %p1997_p8 = scmp.ne.s32.totalorder %s2306_s7, %s1996_s21  ;;  %p2003_p13 = scmp.lt.u32.totalorder %s2001_s17, %s1996_s21 }
  0x2c   : > { %p2005_p1 = scmp.lt.u32.totalorder %s1996_s21, %s2306_s7 }
  0x2d   : > { %p1999_p10 = pnand %p1998_p9, %p1997_p8  ;;  %p2004_p0 = por %p2003_p13, %p2002_p3 }
  0x2f   : > { %p2000_p11 = pneg %p1999_p10  ;;  %p2006_p5 = por %p2005_p1, %p2004_p0 }
  0x31   : > { %p2007_p6 = pnand %p2006_p5, %p2000_p11 }
  0x33   : > { %2010 = shalt.err (!%p2007_p6)
}
  0x34   : > { %s2011_s12 = scalar_lea.vmem %s2308_s19, 128  ;;  %s2150_s18 = smov [#allocation5]  }
  0x35   : > { %p2012_p8 = scmp.ne.s32.totalorder %s2308_s19, %s2011_s12  ;;  %s2016_s22 = sshll.u32 %s2150_s18, 4  ;;  %s2017_s22 = int_to_ptr.vmem [resolvable:$false] %s2016_s22 }
  0x36   : > { %s2018_s10 = scalar_lea.vmem %s2017_s22, 256  ;;  %p2019_p12 = scmp.lt.s32.totalorder %s2308_s19, %s2017_s22 }
  0x37   : > { %p2014_p10 = pnand %p2012_p8, %p1998_p9  ;;  %p2020_p3 = scmp.lt.s32.totalorder %s2018_s10, %s2011_s12 }
  0x39   : > { %p2015_p2 = pneg %p2014_p10  ;;  %p2021_p13 = por %p2020_p3, %p2019_p12 }
  0x3b   : > { %p2022_p0 = pnand %p2021_p13, %p2015_p2 }
  0x3d   : > { %2025 = shalt.err (!%p2022_p0)
}
  0x3e   : > { %1859 = dma.hbm_to_vmem [thread:$0]  (!%p2312_p4), %s2306_s7, 128, %s2308_s19, %s269_s9  }
  0x3f   : > { %p2628_p5 = scmp.lt.s32.totalorder %s2148_s11, 5  ;;  %p2629_p6 = scmp.ge.s32.totalorder %s2148_s11, 1 }
  0x41   : > { %p285_p9 = pnand %p2629_p6, %p2628_p5 }
  0x42   : > { %s290_s21 = sand.u32 (!%p285_p9), 1, %s2124_s28  }
  0x43   : > { %288 = sbr.rel (%p285_p9) target bundleno = 1862 (0x746), region = 48  ;;  %s2348_s17 = sshll.u32 (!%p285_p9), %s290_s21, 3 }
  0x44   : > { %s291_s16 = scalar_lea.sflag (!%p285_p9), [#allocation6], %s290_s21 }
  0x4a   : > { %2099 = dma.done.wait (%p2276_p7), %s291_s16, 128  }
  0x4b   : > { %2101 = vsyncadd (%p2276_p7), %s291_s16, 4294967168  ;;  %s2611_s7 = sand.u32 1, %s2112_s25   ;;  %s2357_s19 = sshll.u32 %s2132_s30, 1 }
  0x4c   : > { %s1638_s13 = sshll.u32 %s2611_s7, 4  ;;  %p335_p12 = scmp.lt.s32.totalorder %s2136_s8, 1 }
  0x4d   : > { %p337_p2 = scmp.lt.s32.totalorder %s2357_s19, 3  ;;  %s2370_s1 = scalar_lea.vmem [#allocation8], %s1638_s13 }
  0x4e   : > { %s336_s9 = scalar_select %p335_p12, %s2136_s8, 1 }
  0x4f   : > { %s338_s18 = scalar_select %p337_p2, %s2357_s19, 3 }
  0x50   : > { %s1640_s22 = sshll.u32 %s336_s9, 2  ;;  %p1642_p7 = scmp.ne.s32.totalorder %s2132_s30, 0 }
  0x51   : > { %s340_s10 = sadd.s32 %s1640_s22, %s338_s18  ;;  %v350_v0 = vld [vmem:[%s2599_s3] sm:$0xff] (!%p1642_p7)  ;;  %v351_v1 = vld [vmem:[%s2599_s3 + $0x8] sm:$0xff] (!%p1642_p7)  ;;  %v2151_v3 = vmov (!%p1642_p7), 0.0|0.0   ;;  %v352_v6 = vld [vmem:[%s2599_s3 + $0x10] sm:$0xff] (!%p1642_p7)  ;;  %vm2152_vm0 = vmmov (!%p1642_p7), 0   ;;  %v2153_v11 = vmov (!%p1642_p7), 0.0  }
  0x52   : > { %s1641_s20 = sshll.u32 %s340_s10, 3  ;;  %348 = sbr.rel (%p1642_p7) target bundleno = 309 (0x135), region = 56  ;;  %v432_v2 = vld [vmem:[%s2600_s4] sm:$0xff] (!%p1642_p7)  ;;  %1818 = vmatprep.subr.bf16.mxu0 (!%p1642_p7), %v2151_v3  ;;  %1827 = vmatprep.subr.bf16.mxu1 (!%p1642_p7), %v2151_v3  ;;  %v1819_v4 = vpack.c.bf16 (!%p1642_p7), %v351_v1, %v350_v0  ;;  %v433_v5 = vld [vmem:[%s2600_s4 + $0x8] sm:$0xff] (!%p1642_p7)  ;;  %v353_v7 = vld [vmem:[%s2599_s3 + $0x18] sm:$0xff] (!%p1642_p7)  ;;  %vm356_vm1 = vcmask (!%p1642_p7), 392192  }
  0x53   : > { %s2368_s12 = scalar_lea.vmem %s2596_s0, %s1641_s20  ;;  %v1828_v8 = vpack.c.bf16 (!%p1642_p7), %v433_v5, %v432_v2  ;;  %v434_v9 = vld [vmem:[%s2600_s4 + $0x10] sm:$0xff] (!%p1642_p7)  ;;  %v435_v10 = vld [vmem:[%s2600_s4 + $0x18] sm:$0xff] (!%p1642_p7)  ;;  %1738 = vmatprep.mubr.msk.f32.mxu0 (!%p1642_p7), %vm2152_vm0, %v2153_v11  ;;  %1753 = vmatprep.mubr.msk.f32.mxu1 (!%p1642_p7), %vm2152_vm0, %v2153_v11  ;;  %v1822_v12 = vpack.c.bf16 (!%p1642_p7), %v353_v7, %v352_v6  ;;  %v354_v14 = vld [vmem:[%s2599_s3 + $0x20] sm:$0xff] (!%p1642_p7)  ;;  %s2630_s27 = scalar_lea.vmem (!%p1642_p7), [#allocation5], %s2348_s17  ;;  %vm430_vm2 = vcmask (!%p1642_p7), 261120  }
  0x54   : > { %1820 = vmatpush3.bf16.msra.mxu0 (!%p1642_p7), %v1819_v4  ;;  %v1831_v13 = vpack.c.bf16 (!%p1642_p7), %v435_v10, %v434_v9  ;;  %v355_v15 = vld [vmem:[%s2599_s3 + $0x28] sm:$0xff] (!%p1642_p7)  ;;  %v436_v16 = vld [vmem:[%s2600_s4 + $0x20] sm:$0xff] (!%p1642_p7) }
  0x55   : > { %1829 = vmatpush3.bf16.msra.mxu1 (!%p1642_p7), %v1828_v8  ;;  %1821 = vmatprep.subr.bf16.mxu0 (!%p1642_p7), %v2151_v3  ;;  %v437_v17 = vld [vmem:[%s2600_s4 + $0x28] sm:$0xff] (!%p1642_p7)  ;;  %v1825_v18 = vpack.c.bf16 (!%p1642_p7), %v355_v15, %v354_v14 }
  0x56   : > { %1830 = vmatprep.subr.bf16.mxu1 (!%p1642_p7), %v2151_v3  ;;  %v1834_v19 = vpack.c.bf16 (!%p1642_p7), %v437_v17, %v436_v16  ;;  %v349_v20 = vld [vmem:[%s2630_s27] sm:$0xff] (!%p1642_p7) }
  0x58   : > { %1823 = vmatpush3.bf16.msra.mxu0 (!%p1642_p7), %v1822_v12 }
  0x59   : > { %1832 = vmatpush3.bf16.msra.mxu1 %v1831_v13  ;;  %1824 = vmatprep.subr.bf16.mxu0 %v2151_v3 }
  0x5a   : > { %1833 = vmatprep.subr.bf16.mxu1 %v2151_v3 }
  0x5c   : > { %1826 = vmatpush3.bf16.msra.mxu0 %v1825_v18 }
  0x5d   : > { %1835 = vmatpush3.bf16.msra.mxu1 %v1834_v19 }
  0x5f   : > { %1739 = vmatmul.mubr.msk.f32.vlgmr.msra.gmra.mrb[0].mxu0 %vm356_vm1, %v349_v20 }
  0x60   : > { %1754 = vmatmul.mubr.msk.f32.vlgmr.msra.gmra.mrb[0].mxu1 %vm356_vm1, %v349_v20 }
 0x132   : > { %v426_v21 = vpop.f32.mrb[0].mxu0 }
 0x133   : > { %431 = vst.msk [vmem:[#allocation2] sm:$0xff] %vm430_vm2, %v426_v21  ;;  %v504_v22 = vpop.f32.mrb[0].mxu1  ;;  %v1740_v23 = vpop.f32.mrb[1].mxu0 }
 0x134   : > { %508 = vst.msk [vmem:[#allocation3] sm:$0xff] %vm430_vm2, %v504_v22  ;;  %v1755_v24 = vpop.f32.mrb[1].mxu1 }
 0x135 PF: > { %v511_v25 = vld [vmem:[%s2598_s2] sm:$0xff]  ;;  %v512_v26 = vld [vmem:[%s2598_s2 + $0x8] sm:$0xff]  ;;  %v513_v27 = vld [vmem:[%s2598_s2 + $0x10] sm:$0xff]  ;;  %vm515_vm3 = vcmask 261120   ;;  %vm599_vm4 = vcmask 64512   ;;  %s2154_s13 = smov 120  }
 0x136   : > { %v1836_v28 = vpack.c.bf16 %v512_v26, %v511_v25  ;;  %v514_v29 = vld [vmem:[%s2598_s2 + $0x18] sm:$0xff]  ;;  %v509_v30 = vld [vmem:[%s2368_s12] sm:$0xff]  ;;  %v510_v33 = vld [vmem:[%s2368_s12 + $0x8] sm:$0xff]  ;;  %s2155_s22 = smov 112   ;;  %s2156_s30 = smov 104   ;;  %vm994_vm5 = vcmask 130112  }
 0x137   : > { %v1840_v31 = vpack.c.bf16 %v514_v29, %v513_v27  ;;  %1764 = vmatprep.mubr.msk.f32.mxu0 %vm515_vm3, %v509_v30  ;;  %s2157_s21 = smov 8   ;;  %s2158_s16 = smov 16   ;;  %vm1202_vm6 = vcmask 195712   ;;  %vm1410_vm7 = vcmask 261312  }
 0x138   : > { %1837 = vmatprep.subr.bf16.mxu0 %v1836_v28  ;;  %s2159_s9 = smov 24   ;;  %s1672_s18 = sshll.u32 %s2136_s8, 2 }
 0x139   : > { %1839 = vmatpush3.bf16.msra.mxu0 %v1836_v28  ;;  %s1525_s10 = sshll.u32 %s2370_s1, 4  ;;  %s2631_s28 = sld [smem:[#allocation19_spill]]  ;;  %s2526_s10 = int_to_ptr.vmem [resolvable:$true] %s1525_s10 }
 0x13a   : > { %v789_v32 = vld [vmem:[#allocation2] sm:$0xff]  ;;  %1841 = vmatprep.subr.bf16.mxu0 %v1840_v31  ;;  %s2633_s8 = sand.u32 1, %s2112_s25   ;;  %s2026_s17 = scalar_lea.vmem %s2526_s10, 256 }
 0x13b   : > { %796 = vrot.lane.b32.xlu1 %v789_v32, %s2154_s13  ;;  %1767 = vmatprep.subr.msk.mxu1 %vm599_vm4, %v789_v32  ;;  %v598_v47 = vld [vmem:[#allocation3] sm:$0xff]  ;;  %p2027_p4 = scmp.ne.s32.totalorder %s2526_s10, %s2026_s17  ;;  %p2634_p11 = scmp.ne.s32.totalorder %s2623_s23, 0 }
 0x13c   : > { %1768 = vmatpush3.xpose.msk.msra.mxu1 %vm599_vm4, %v789_v32 }
 0x13d   : > { %1843 = vmatpush3.bf16.msra.mxu0 %v1840_v31  ;;  %1772 = vmatprep.subr.mxu1 %v598_v47  ;;  %p2028_p1 = pnand %p2027_p4, %p2634_p11 }
 0x13f   : > { %s2632_s7 = smov %s2631_s28  ;;  %p2029_p8 = pneg %p2028_p1 }
 0x140   : > { %1765 = vmatmul.mubr.msk.f32.vlgmr.msra.gmra.mrb[0].mxu0 %vm515_vm3, %v510_v33 }
 0x1ad   : > { %v797_v36 = vpop.permute.xlu1 %796 }
 0x213   : > { %v1766_v34 = vpop.f32.mrb[0].mxu0 }
 0x214   : > { %v588_v35 = vpop.f32.mrb[1].mxu0 }
 0x215   : > { %791 = vrot.lane.b32.xlu1 %v588_v35, %s2154_s13  ;;  %1769 = vmatprep.mubr.msk.f32.mxu1 %vm599_vm4, %v588_v35 }
 0x216   : > { %1770 = vmatmul.mubr.msk.f32.vlgmr.msra.gmra.mrb[0].mxu1 %vm599_vm4, %v1766_v34 }
 0x217   : > { %1773 = vmatpush3.msra.mxu1 %v598_v47 }
 0x218   : > { %1777 = vmatprep.subr.msk.mxu1 %vm599_vm4, %v797_v36 }
 0x219   : > { %1004 = vrot.lane.b32.xlu1 %v789_v32, %s2155_s22 }
 0x21d   : > { %999 = vrot.lane.b32.xlu1 %v588_v35, %s2155_s22 }
 0x221   : > { %1001 = vrot.lane.b32.xlu1 %v1766_v34, %s2155_s22 }
 0x225   : > { %1212 = vrot.lane.b32.xlu1 %v789_v32, %s2156_s30 }
 0x229   : > { %1207 = vrot.lane.b32.xlu1 %v588_v35, %s2156_s30 }
 0x22d   : > { %1209 = vrot.lane.b32.xlu1 %v1766_v34, %s2156_s30 }
 0x287   : > { %v792_v37 = vpop.permute.xlu1 %791 }
 0x28b   : > { %v1005_v38 = vpop.permute.xlu1 %1004 }
 0x28c   : > { %1787 = vmatprep.subr.msk.mxu0 %vm599_vm4, %v1005_v38 }
 0x28d   : > { %1788 = vmatpush3.xpose.msk.msra.mxu0 %vm599_vm4, %v1005_v38 }
 0x28f   : > { %v1000_v39 = vpop.permute.xlu1 %999 }
 0x290   : > { %1789 = vmatprep.mubr.msk.f32.mxu0 %vm599_vm4, %v1000_v39 }
 0x293   : > { %v1002_v40 = vpop.permute.xlu1 %1001 }
 0x294   : > { %1790 = vmatmul.mubr.msk.f32.vlgmr.msra.gmra.mrb[2].mxu0 %vm599_vm4, %v1002_v40 }
 0x297   : > { %v1213_v41 = vpop.permute.xlu1 %1212 }
 0x298   : > { %1797 = vmatprep.subr.msk.mxu0 %vm599_vm4, %v1213_v41 }
 0x299   : > { %1798 = vmatpush3.xpose.msk.msra.mxu0 %vm599_vm4, %v1213_v41 }
 0x29b   : > { %v1208_v42 = vpop.permute.xlu1 %1207 }
 0x29c   : > { %1799 = vmatprep.mubr.msk.f32.mxu0 %vm599_vm4, %v1208_v42 }
 0x29f   : > { %v1210_v43 = vpop.permute.xlu1 %1209 }
 0x2a0   : > { %1800 = vmatmul.mubr.msk.f32.vlgmr.msra.gmra.mrb[4].mxu0 %vm599_vm4, %v1210_v43 }
 0x2e9   : > { %v1771_v44 = vpop.f32.mrb[0].mxu1 }
 0x2ea   : > { %v675_v45 = vpop.f32.mrb[1].mxu1  ;;  %v687_v48 = vsel %vm599_vm4, %v1771_v44, -inf }
 0x2eb   : > { %v684_v46 = vsel %vm599_vm4, %v675_v45, -inf }
 0x2ec   : > { %685 = vmax.xlane.f32.xlu0 %v684_v46 }
 0x2f0   : > { %688 = vmax.xlane.f32.xlu0 %v687_v48 }
 0x306   : > { %793 = vrot.lane.b32.xlu0 %v1766_v34, %s2154_s13 }
 0x367   : > { %v1791_v49 = vpop.f32.mrb[2].mxu0 }
 0x368   : > { %v1078_v50 = vpop.f32.mrb[3].mxu0  ;;  %v1090_v51 = vsel %vm599_vm4, %v1791_v49, -inf }
 0x369   : > { %1091 = vmax.xlane.f32.xlu0 %v1090_v51  ;;  %v1087_v52 = vsel %vm599_vm4, %v1078_v50, -inf }
 0x36d   : > { %1088 = vmax.xlane.f32.xlu0 %v1087_v52 }
 0x373   : > { %v2453_v53 = vpop.f32.mrb[4].mxu0 }
 0x374   : > { %v1286_v54 = vpop.f32.mrb[5].mxu0  ;;  %v1298_v7 = vsel %vm599_vm4, %v2453_v53, -inf }
 0x375   : > { %v1295_v55 = vsel %vm599_vm4, %v1286_v54, -inf }
 0x376   : > { %1296 = vmax.xlane.f32.xlu1 %v1295_v55  ;;  %v1415_v55 = vld [vmem:[%s2601_s5] sm:$0xff] }
 0x379   : > { %v686_v56 = vpop.xlane.xlu0 %685 }
 0x37a   : > { %v690_v57 = vsub.f32 %v675_v45, %v686_v56  ;;  %v1416_v56 = vld [vmem:[%s2601_s5 + $0x8] sm:$0xff] }
 0x37c   : > { %v692_v58 = vmul.f32 1.442695, %v690_v57  ;;  %v1844_v57 = vpack.c.bf16 %v1416_v56, %v1415_v55 }
 0x37d   : > { %v689_v59 = vpop.xlane.xlu0 %688 }
 0x37e   : > { %1964 = vpow2.f32 %v692_v58  ;;  %v691_v60 = vsub.f32 %v1771_v44, %v689_v59  ;;  %v1417_v58 = vld [vmem:[%s2601_s5 + $0x10] sm:$0xff]  ;;  %v1418_v59 = vld [vmem:[%s2601_s5 + $0x18] sm:$0xff]  ;;  %1845 = vmatprep.subr.bf16.mxu0 %v1844_v57 }
 0x37f   : > { %1847 = vmatpush3.bf16.msra.mxu0 %v1844_v57 }
 0x380   : > { %v694_v61 = vmul.f32 1.442695, %v691_v60 }
 0x381   : > { %v794_v0 = vpop.permute.xlu0 %793 }
 0x382   : > { %1966 = vpow2.f32 %v694_v61 }
 0x388   : > { %v2456_v62 = vpop.eup %1964 }
 0x389   : > { %1774 = vmatprep.mubr.msk.f32.mxu1 %vm599_vm4, %v2456_v62  ;;  %v696_v41 = vsel %vm599_vm4, %v2456_v62, 0.0  ;;  %v1848_v62 = vpack.c.bf16 %v1418_v59, %v1417_v58 }
 0x38b   : > { %1849 = vmatprep.subr.bf16.mxu0 %v1848_v62 }
 0x38c   : > { %v2460_v63 = vpop.eup %1966  ;;  %1851 = vmatpush3.bf16.msra.mxu0 %v1848_v62 }
 0x38d   : > { %1775 = vmatmul.mubr.msk.f32.vlgmr.msra.gmra.mrb[2].mxu1 %vm599_vm4, %v2460_v63  ;;  %v699_v42 = vsel %vm599_vm4, %v2460_v63, 0.0 }
 0x38e   : > { %1778 = vmatpush3.xpose.msk.msra.mxu1 %vm599_vm4, %v797_v36  ;;  %1779 = vmatprep.mubr.msk.f32.mxu1 %vm599_vm4, %v792_v37 }
 0x391   : > { %1780 = vmatmul.mubr.msk.f32.vlgmr.msra.gmra.mrb[4].mxu1 %vm599_vm4, %v794_v0 }
 0x3f6   : > { %v1092_v8 = vpop.xlane.xlu0 %1091 }
 0x3f7   : > { %v1094_v10 = vsub.f32 %v1791_v49, %v1092_v8 }
 0x3f9   : > { %v1097_v12 = vmul.f32 1.442695, %v1094_v10 }
 0x3fa   : > { %v1089_v9 = vpop.xlane.xlu0 %1088 }
 0x3fb   : > { %v1093_v11 = vsub.f32 %v1078_v50, %v1089_v9  ;;  %1968 = vpow2.f32 %v1097_v12 }
 0x3fd   : > { %v1095_v13 = vmul.f32 1.442695, %v1093_v11 }
 0x3ff   : > { %1970 = vpow2.f32 %v1095_v13 }
 0x403   : > { %v1297_v18 = vpop.xlane.xlu1 %1296 }
 0x404   : > { %v1301_v19 = vsub.f32 %v1286_v54, %v1297_v18 }
 0x405   : > { %v1969_v14 = vpop.eup %1968 }
 0x406   : > { %v1102_v16 = vsel %vm599_vm4, %v1969_v14, 0.0  ;;  %v1303_v24 = vmul.f32 1.442695, %v1301_v19 }
 0x409   : > { %v1971_v15 = vpop.eup %1970 }
 0x40a   : > { %v1099_v17 = vsel %vm599_vm4, %v1971_v15, 0.0 }
 0x460   : > { %v2467_v1 = vpop.f32.mrb[2].mxu1 }
 0x461   : > { %v2469_v2 = vpop.f32.mrb[3].mxu1 }
 0x464   : > { %v1781_v3 = vpop.f32.mrb[4].mxu1 }
 0x465   : > { %v870_v4 = vpop.f32.mrb[5].mxu1  ;;  %v882_v5 = vsel %vm599_vm4, %v1781_v3, -inf }
 0x466   : > { %883 = vmax.xlane.f32.xlu1 %v882_v5  ;;  %v879_v6 = vsel %vm599_vm4, %v870_v4, -inf }
 0x467   : > { %880 = vmax.xlane.f32.xlu0 %v879_v6 }
 0x46b   : > { %1299 = vmax.xlane.f32.xlu0 %v1298_v7 }
 0x477   : > { %898 = vrot.lane.b32.xlu1 %v598_v47, %s2154_s13  ;;  %s1522_s13 = sadd.s32 %s1672_s18, %s2357_s19  ;;  %s2534_s19 = scalar_lea.sflag [#allocation7], %s2633_s8 }
 0x478   : > { %s1673_s12 = sshll.u32 %s1522_s13, 7 }
 0x479   : > { %s2524_s20 = scalar_lea.hbm %s2631_s28, %s1673_s12 }
 0x47b   : > { %1314 = vrot.lane.b32.xlu1 %v598_v47, %s2156_s30 }
 0x481   : > { %1106 = vrot.lane.b32.xlu0 %v598_v47, %s2155_s22 }
 0x49f   : > { %1103 = vadd.xlane.f32.xlu1 %v1102_v16 }
 0x4a0   : > { %1100 = vadd.xlane.f32.xlu0 %v1099_v17 }
 0x4f3   : > { %v884_v20 = vpop.xlane.xlu1 %883 }
 0x4f4   : > { %v886_v21 = vsub.f32 %v1781_v3, %v884_v20  ;;  %v881_v22 = vpop.xlane.xlu0 %880 }
 0x4f5   : > { %v885_v23 = vsub.f32 %v870_v4, %v881_v22 }
 0x4f6   : > { %v889_v25 = vmul.f32 1.442695, %v886_v21 }
 0x4f7   : > { %v887_v26 = vmul.f32 1.442695, %v885_v23  ;;  %v899_v27 = vpop.permute.xlu1 %898  ;;  %v1667_v23 = vld [vmem:[%s2602_s6] ss:$0 sm:$0xff] }
 0x4f8   : > { %1972 = vpow2.f32 %v889_v25  ;;  %v1300_v28 = vpop.xlane.xlu0 %1299  ;;  %1782 = vmatprep.subr.mxu1 %v899_v27 }
 0x4f9   : > { %1974 = vpow2.f32 %v887_v26  ;;  %v1302_v29 = vsub.f32 %v2453_v53, %v1300_v28  ;;  %1783 = vmatpush3.msra.mxu1 %v899_v27 }
 0x4fa   : > { %1976 = vpow2.f32 %v1303_v24 }
 0x4fb   : > { %v1305_v30 = vmul.f32 1.442695, %v1302_v29  ;;  %v1315_v37 = vpop.permute.xlu1 %1314 }
 0x4fc   : > { %v1107_v31 = vpop.permute.xlu0 %1106 }
 0x4fd   : > { %1978 = vpow2.f32 %v1305_v30  ;;  %1792 = vmatprep.subr.mxu1 %v1107_v31 }
 0x502   : > { %v1973_v32 = vpop.eup %1972 }
 0x503   : > { %v1975_v33 = vpop.eup %1974  ;;  %v894_v34 = vsel %vm599_vm4, %v1973_v32, 0.0 }
 0x504   : > { %v1977_v35 = vpop.eup %1976  ;;  %895 = vadd.xlane.f32.xlu0 %v894_v34  ;;  %1784 = vmatprep.mubr.msk.f32.mxu1 %vm599_vm4, %v1975_v33  ;;  %v891_v36 = vsel %vm599_vm4, %v1975_v33, 0.0 }
 0x505   : > { %1785 = vmatmul.mubr.msk.f32.vlgmr.msra.gmra.mrb[6].mxu1 %vm599_vm4, %v1973_v32  ;;  %892 = vadd.xlane.f32.xlu1 %v891_v36  ;;  %v1307_v39 = vsel %vm599_vm4, %v1977_v35, 0.0 }
 0x506   : > { %1793 = vmatpush3.msra.mxu1 %v1107_v31  ;;  %1794 = vmatprep.mubr.msk.f32.mxu1 %vm599_vm4, %v1971_v15 }
 0x507   : > { %v1979_v38 = vpop.eup %1978  ;;  %1802 = vmatprep.subr.mxu1 %v1315_v37 }
 0x508   : > { %1308 = vadd.xlane.f32.xlu0 %v1307_v39  ;;  %v1310_v40 = vsel %vm599_vm4, %v1979_v38, 0.0 }
 0x509   : > { %1311 = vadd.xlane.f32.xlu1 %v1310_v40  ;;  %1795 = vmatmul.mubr.msk.f32.vlgmr.msra.gmra.mrb[8].mxu1 %vm599_vm4, %v1969_v14 }
 0x50a   : > { %1803 = vmatpush3.msra.mxu1 %v1315_v37  ;;  %1804 = vmatprep.mubr.msk.f32.mxu1 %vm599_vm4, %v1977_v35 }
 0x50c   : > { %697 = vadd.xlane.f32.xlu0 %v696_v41 }
 0x50d   : > { %700 = vadd.xlane.f32.xlu1 %v699_v42  ;;  %1805 = vmatmul.mubr.msk.f32.vlgmr.msra.gmra.mrb[10].mxu1 %vm599_vm4, %v1979_v38 }
 0x52c   : > { %v1104_v44 = vpop.xlane.xlu1 %1103 }
 0x52d   : > { %v1101_v43 = vpop.xlane.xlu0 %1100 }
 0x591   : > { %v896_v45 = vpop.xlane.xlu0 %895 }
 0x592   : > { %v893_v46 = vpop.xlane.xlu1 %892 }
 0x595   : > { %v1309_v47 = vpop.xlane.xlu0 %1308 }
 0x596   : > { %v1312_v48 = vpop.xlane.xlu1 %1311 }
 0x599   : > { %v698_v49 = vpop.xlane.xlu0 %697 }
 0x59a   : > { %1980 = vrcp.f32 %v698_v49  ;;  %v701_v50 = vpop.xlane.xlu1 %700 }
 0x59b   : > { %1982 = vrcp.f32 %v701_v50 }
 0x59c   : > { %1984 = vrcp.f32 %v896_v45 }
 0x59d   : > { %1986 = vrcp.f32 %v893_v46 }
 0x59e   : > { %1988 = vrcp.f32 %v1104_v44 }
 0x59f   : > { %1990 = vrcp.f32 %v1101_v43 }
 0x5a0   : > { %1992 = vrcp.f32 %v1312_v48 }
 0x5a1   : > { %1994 = vrcp.f32 %v1309_v47 }
 0x5a4   : > { %v1981_v51 = vpop.eup %1980 }
 0x5a5   : > { %v1983_v52 = vpop.eup %1982  ;;  %v785_v53 = vmul.f32 %v1981_v51, %v2469_v2 }
 0x5a6   : > { %v786_v54 = vmul.f32 %v1983_v52, %v2467_v1  ;;  %v1985_v60 = vpop.eup %1984 }
 0x5a7   : > { %787 = vst.msk [vmem:[#allocation4] sm:$0xff] %vm599_vm4, %v785_v53  ;;  %v1987_v63 = vpop.eup %1986 }
 0x5a8   : > { %788 = vst.msk [vmem:[#allocation4 + $0x8] sm:$0xff] %vm599_vm4, %v786_v54  ;;  %v1989_v3 = vpop.eup %1988 }
 0x5a9   : > { %v1991_v5 = vpop.eup %1990 }
 0x5aa   : > { %v1993_v9 = vpop.eup %1992 }
 0x5ab   : > { %v1995_v11 = vpop.eup %1994 }
 0x5d8   : > { %v1786_v61 = vpop.f32.mrb[6].mxu1 }
 0x5d9   : > { %v985_v0 = vmul.f32 %v1985_v60, %v1786_v61  ;;  %v973_v1 = vpop.f32.mrb[7].mxu1 }
 0x5da   : > { %v984_v2 = vmul.f32 %v1987_v63, %v973_v1 }
 0x5db   : > { %990 = vrot.lane.b32.xlu1 %v985_v0, %s2157_s21 }
 0x5dc   : > { %988 = vrot.lane.b32.xlu0 %v984_v2, %s2157_s21  ;;  %v1796_v4 = vpop.f32.mrb[8].mxu1 }
 0x5dd   : > { %v1193_v6 = vmul.f32 %v1989_v3, %v1796_v4  ;;  %v1181_v7 = vpop.f32.mrb[9].mxu1 }
 0x5de   : > { %v1192_v8 = vmul.f32 %v1991_v5, %v1181_v7 }
 0x5e0   : > { %1198 = vrot.lane.b32.xlu0 %v1193_v6, %s2158_s16  ;;  %v1806_v10 = vpop.f32.mrb[10].mxu1  ;;  %1196 = vrot.lane.b32.xlu1 %v1192_v8, %s2158_s16  ;;  %s2160_s16 = smov [#allocation8]  }
 0x5e1   : > { %v1401_v12 = vmul.f32 %v1993_v9, %v1806_v10  ;;  %v1389_v13 = vpop.f32.mrb[11].mxu1 }
 0x5e2   : > { %v1400_v14 = vmul.f32 %v1995_v11, %v1389_v13 }
 0x5e4   : > { %1406 = vrot.lane.b32.xlu0 %v1401_v12, %s2159_s9  ;;  %1404 = vrot.lane.b32.xlu1 %v1400_v14, %s2159_s9  ;;  %s2030_s9 = sshll.u32 %s2160_s16, 4  ;;  %s2031_s9 = int_to_ptr.vmem [resolvable:$false] %s2030_s9 }
 0x5e5   : > { %s2032_s18 = scalar_lea.vmem %s2031_s9, 512  ;;  %p2033_p10 = scmp.lt.s32.totalorder %s2526_s10, %s2031_s9 }
 0x5e6   : > { %p2034_p3 = scmp.lt.s32.totalorder %s2032_s18, %s2026_s17 }
 0x5e8   : > { %p2035_p13 = por %p2034_p3, %p2033_p10 }
 0x5ea   : > { %p2036_p0 = pnand %p2035_p13, %p2029_p8 }
 0x64d   : > { %v991_v15 = vpop.permute.xlu1 %990 }
 0x64e   : > { %996 = vst.msk [vmem:[#allocation4 + $0x8] sm:$0xff] %vm994_vm5, %v991_v15  ;;  %v989_v16 = vpop.permute.xlu0 %988 }
 0x64f   : > { %995 = vst.msk [vmem:[#allocation4] sm:$0xff] %vm994_vm5, %v989_v16 }
 0x652   : > { %v1197_v17 = vpop.permute.xlu1 %1196  ;;  %v1199_v18 = vpop.permute.xlu0 %1198 }
 0x653   : > { %1203 = vst.msk [vmem:[#allocation4] sm:$0xff] %vm1202_vm6, %v1197_v17  ;;  %1204 = vst.msk [vmem:[#allocation4 + $0x8] sm:$0xff] %vm1202_vm6, %v1199_v18 }
 0x656   : > { %v1405_v19 = vpop.permute.xlu1 %1404  ;;  %v1407_v20 = vpop.permute.xlu0 %1406 }
 0x657   : > { %1411 = vst.msk [vmem:[#allocation4] sm:$0xff] %vm1410_vm7, %v1405_v19  ;;  %1412 = vst.msk [vmem:[#allocation4 + $0x8] sm:$0xff] %vm1410_vm7, %v1407_v20 }
 0x65e   : > { %v1413_v21 = vld [vmem:[#allocation4] sm:$0xff]  ;;  %v1414_v22 = vld [vmem:[#allocation4 + $0x8] sm:$0xff] }
 0x65f   : > { %1815 = vmatprep.mubr.msk.f32.mxu0 %vm515_vm3, %v1413_v21 }
 0x660   : > { %1816 = vmatmul.mubr.msk.f32.vlgmr.msra.gmra.mrb[6].mxu0 %vm515_vm3, %v1414_v22 }
 0x733   : > { %v1817_v24 = vpop.f32.mrb[6].mxu0 }
 0x734   : > { %v1504_v25 = vadd.f32 %v1817_v24, %v1667_v23  ;;  %v1498_v26 = vpop.f32.mrb[7].mxu0 }
 0x735   : > { %v1499_v27 = vadd.f32 %v1667_v23, %v1498_v26 }
 0x736   : > { %1508 = vst.msk [vmem:[%s2370_s1 + $0x8] sm:$0xff] %vm515_vm3, %v1504_v25 }
 0x737   : > { %1507 = vst.msk [vmem:[%s2370_s1] sm:$0xff] %vm515_vm3, %v1499_v27 }
 0x738   : > { %2039 = shalt.err (!%p2036_p0)
}
 0x739   : > { %s2040_s1 = scalar_lea.hbm %s2524_s20, 256  ;;  %s2044_s30 = scalar_lea.hbm %s2632_s7, 1024 }
 0x73a   : > { %p2041_p5 = scmp.ne.s32.totalorder %s2524_s20, %s2040_s1  ;;  %p2045_p12 = scmp.lt.u32.totalorder %s2524_s20, %s2632_s7 }
 0x73b   : > { %p2046_p2 = scmp.lt.u32.totalorder %s2044_s30, %s2040_s1  ;;  %p2048_p4 = scmp.lt.u32.totalorder %s2040_s1, %s2524_s20 }
 0x73c   : > { %p2042_p6 = pnand %p2041_p5, %p2634_p11 }
 0x73d   : > { %p2047_p7 = por %p2046_p2, %p2045_p12 }
 0x73e   : > { %p2043_p9 = pneg %p2042_p6 }
 0x73f   : > { %p2049_p1 = por %p2048_p4, %p2047_p7 }
 0x741   : > { %p2050_p8 = pnand %p2049_p1, %p2043_p9 }
 0x743   : > { %2053 = shalt.err (!%p2050_p8)
}
 0x744   : > { %s2161_s27 = smov 128  }
 0x745   : > { %1854 = dma.vmem_to_hbm [thread:$0]  (%p2634_p11), %s2526_s10, 256, %s2524_s20, %s2534_s19, %s2161_s27, %s2161_s27, %s2157_s21  }
 0x746 PF: > { %p1865_p10 = scmp.ge.s32.totalorder %s2148_s11, 2  ;;  %s1540_s28 = sand.u32 1, %s2108_s24  }
 0x747   : > { %p2635_p3 = scmp.ne.s32.totalorder %s2625_s15, 0  ;;  %s1541_s8 = scalar_lea.sflag [#allocation7], %s1540_s28 }
 0x749   : > { %p1861_p13 = pnand %p1865_p10, %p2635_p3 }
 0x74b   : > { %2103 = dma.done.wait (!%p1861_p13), %s1541_s8, 256  }
 0x74c   : > { %2105 = vsyncadd (!%p1861_p13), %s1541_s8, 4294967040  ;;  %s23_s11 = sadd.s32 1, %s2148_s11   ;;  %s2636_s27 = sld [smem:[#allocation11_spill]] }
 0x74d   : > { %p20_p0 = scmp.ge.s32.totalorder %s23_s11, 6   ;;  %s2637_s28 = sld [smem:[#allocation12_spill]] }
 0x74e   : > { %s2638_s29 = sld [smem:[#allocation17_spill]]  ;;  %s2639_s30 = sld [smem:[#allocation13_spill]] }
 0x74f   : > { %s2640_s8 = sld [smem:[#allocation14_spill]]  ;;  %s2641_s9 = sld [smem:[#allocation15_spill]] }
 0x750   : > { %s2642_s10 = sld [smem:[#allocation16_spill]]  ;;  %s2643_s24 = smov %s2112_s25 }
 0x751   : > { %s2644_s25 = smov %s2116_s26  ;;  %s2645_s26 = smov %s2292_s14 }
 0x752   :  { %22 = sbr.rel (!%p20_p0) target bundleno = 12 (0xc), region = 100 }
 0x759   :  { %1546 = vsyncpa [#allocation6], 1 }
 0x75a   :  { %1548 = vsyncpa [#allocation6 + $0x1], 1 }
 0x75b   :  { %1549 = vsyncpa [#allocation7], 1 }
 0x75c   :  { %1551 = vsyncpa [#allocation7 + $0x1], 1 }

// kernel: tpu_custom_call.1
= control target key start
LH: loop header
LB: loop body
LE: loop exit
PB: predicated region body
PF: predicated region fallthrough
CT: control target
= control target key end

     0   :  { %s2596_s0 = inlined_call_operand.vmem [shape: f32[2,32,32], index: 0, kind: input, shape index: {}]   ;;  %s2597_s1 = inlined_call_operand.hbm [shape: f32[2,8,48], index: 1, kind: input, shape index: {}]   ;;  %s2598_s2 = inlined_call_operand.vmem [shape: f32[32,32], index: 2, kind: input, shape index: {}]   ;;  %s2599_s3 = inlined_call_operand.vmem [shape: f32[48,32], index: 3, kind: input, shape index: {}]   ;;  %s2600_s4 = inlined_call_operand.vmem [shape: f32[48,32], index: 4, kind: input, shape index: {}]   ;;  %s2601_s5 = inlined_call_operand.vmem [shape: f32[32,32], index: 5, kind: input, shape index: {}]   ;;  %s2602_s6 = inlined_call_operand.vmem [shape: f32[1,32], index: 6, kind: input, shape index: {}]   ;;  %s2603_s7 = inlined_call_operand.hbm [shape: f32[2,32,32], index: 7, kind: output, shape index: {}]  }
   0x1   :  { %2613 = sst [smem:[#allocation18_spill]] %s2597_s1 }
   0x2   :  { %2614 = sst [smem:[#allocation19_spill]] %s2603_s7 }
   0x3   :  { %12 = vsyncpa [#allocation6], 0 }
   0x4   :  { %14 = vsyncpa [#allocation6 + $0x1], 0 }
   0x5   :  { %15 = vsyncpa [#allocation7], 0 }
   0x6   :  { %17 = vsyncpa [#allocation7 + $0x1], 0  ;;  %s2202_s24 = smov 0   ;;  %s2204_s25 = smov 0  }
   0x7   :  { %s2206_s26 = smov 0   ;;  %s2208_s27 = smov 0  }
   0x8   :  { %s2210_s28 = smov 0   ;;  %s2212_s29 = smov 0  }
   0x9   :  { %s2214_s30 = smov 0   ;;  %s2216_s8 = smov 0  }
   0xa   :  { %s2218_s9 = smov 0   ;;  %s2220_s10 = smov 0  }
   0xb   :  { %s2222_s11 = smov 0  }
   0xc LB: > { %2615 = sst [smem:[#allocation11_spill]] %s2124_s28  ;;  %s1630_s12 = sadd.s32 4294967295, %s2148_s11   ;;  %s2148_s11 = sphi %s2222_s11, %s23_s11   ;;  %s2144_s10 = sphi %s2220_s10, %s2642_s10   ;;  %s2140_s9 = sphi %s2218_s9, %s2641_s9   ;;  %s2136_s8 = sphi %s2216_s8, %s2640_s8   ;;  %s2132_s30 = sphi %s2214_s30, %s2639_s30   ;;  %s2128_s29 = sphi %s2212_s29, %s2638_s29   ;;  %s2124_s28 = sphi %s2210_s28, %s2637_s28   ;;  %s2120_s27 = sphi %s2208_s27, %s2636_s27   ;;  %s2116_s26 = sphi %s2206_s26, %s2645_s26   ;;  %s2112_s25 = sphi %s2204_s25, %s2644_s25   ;;  %s2108_s24 = sphi %s2202_s24, %s2643_s24  }
   0xd   : > { %2616 = sst [smem:[#allocation12_spill]] %s2128_s29  ;;  %s1631_s13 = sadd.s32 4294967294, %s2148_s11  }
   0xe   : > { %2617 = sst [smem:[#allocation13_spill]] %s2140_s9  ;;  %s32_s14 = sadd.s32 1, %s2140_s9 }
   0xf   : > { %2618 = sst [smem:[#allocation14_spill]] %s2144_s10  ;;  %s35_s15 = sadd.s32 1, %s2144_s10 }
  0x10   : > { %p33_p0 = scmp.ge.s32.totalorder %s32_s14, 2  ;;  %s70_s16 = sadd.s32 1, %s2128_s29 }
  0x11   : > { %p77_p1 = scmp.ne.s32.totalorder %s2128_s29, %s2124_s28  ;;  %p78_p2 = scmp.eq.s32.totalorder %s2148_s11, 0 }
  0x12   : > { %s2647_s14 = smov (%p33_p0, %s32_s14), 0  ;;  %s2649_s15 = smov (!%p33_p0, %s35_s15), %s2144_s10 }
  0x13   : > { %2619 = sst [smem:[#allocation15_spill]] %s2647_s14  ;;  %p2266_p3 = por %p78_p2, %p77_p1 }
  0x14   : > { %p83_p4 = scmp.ne.s32.totalorder %s2124_s28, %s2120_s27  ;;  %p37_p5 = scmp.ge.s32.totalorder %s2649_s15, 2 }
  0x15   : > { %p84_p6 = scmp.eq.s32.totalorder %s1630_s12, 0  ;;  %s199_s18 = ssub.s32 %s2140_s9, %s2647_s14 }
  0x16   : > { %s203_s19 = sadd.s32 1, %s2116_s26  ;;  %s2651_s15 = smov (%p37_p5, %s2649_s15), 0 }
  0x17   : > { %2621 = sst [smem:[#allocation16_spill]] %s2651_s15  ;;  %p2276_p7 = por %p84_p6, %p83_p4 }
  0x18   : > { %p213_p8 = scmp.ne.s32.totalorder %s2116_s26, %s2112_s25  ;;  %s67_s21 = ssub.s32 %s2144_s10, %s2651_s15 }
  0x19   : > { %p214_p9 = scmp.eq.s32.totalorder %s1630_s12, 3  ;;  %p68_p10 = scmp.eq.s32.totalorder %s67_s21, 0 }
  0x1a   : > { %s200_s22 = sor.u32 %s199_s18, %s67_s21  ;;  %p219_p13 = scmp.ne.s32.totalorder %s2112_s25, %s2108_s24 }
  0x1b   : > { %p201_p11 = scmp.eq.s32.totalorder %s200_s22, 0  ;;  %p2284_p12 = por %p214_p9, %p213_p8 }
  0x1c   : > { %s2289_s27 = scalar_select %p68_p10, %s2128_s29, %s70_s16  }
  0x1d   : > { %s2623_s23 = scalar_select %p2284_p12, 1, 0 }
  0x1e   : > { %2624 = sst [smem:[#allocation17_spill]] %s2289_s27  ;;  %p220_p0 = scmp.eq.s32.totalorder %s1631_s13, 3 }
  0x1f   : > { %s2292_s14 = scalar_select %p201_p11, %s2116_s26, %s203_s19  }
  0x20   : > { %p1864_p1 = scmp.lt.s32.totalorder %s2148_s11, 4  ;;  %p2297_p2 = por %p220_p0, %p219_p13 }
  0x21   : > { %s268_s12 = sand.u32 1, %s2128_s29   ;;  %s1635_s21 = sshll.u32 %s2144_s10, 7 }
  0x22   : > { %s2625_s15 = scalar_select %p2297_p2, 1, 0 }
  0x23   : > { %s1634_s18 = sshll.u32 %s268_s12, 3  ;;  %s2626_s1 = sld [smem:[#allocation18_spill]] }
  0x24   : > { %s272_s16 = scalar_lea.vmem [#allocation5], %s1634_s18  ;;  %p2312_p4 = pnand %p1864_p1, %p2266_p3 }
  0x25   : > { %s279_s19 = sshll.u32 %s272_s16, 4  ;;  %s269_s9 = scalar_lea.sflag [#allocation6], %s268_s12  ;;  %s2308_s19 = int_to_ptr.vmem [resolvable:$true] %s279_s19 }
  0x26   : > { %p1998_p9 = pneg %p2312_p4 }
  0x29   : > { %s2306_s7 = scalar_lea.hbm %s2626_s1, %s1635_s21  ;;  %s2001_s17 = scalar_lea.hbm %s2626_s1, 256 }
  0x2a   : > { %s1996_s21 = scalar_lea.hbm %s2306_s7, 128  ;;  %p2002_p3 = scmp.lt.u32.totalorder %s2306_s7, %s2626_s1 }
  0x2b   : > { %p1997_p8 = scmp.ne.s32.totalorder %s2306_s7, %s1996_s21  ;;  %p2003_p13 = scmp.lt.u32.totalorder %s2001_s17, %s1996_s21 }
  0x2c   : > { %p2005_p1 = scmp.lt.u32.totalorder %s1996_s21, %s2306_s7 }
  0x2d   : > { %p1999_p10 = pnand %p1998_p9, %p1997_p8  ;;  %p2004_p0 = por %p2003_p13, %p2002_p3 }
  0x2f   : > { %p2000_p11 = pneg %p1999_p10  ;;  %p2006_p5 = por %p2005_p1, %p2004_p0 }
  0x31   : > { %p2007_p6 = pnand %p2006_p5, %p2000_p11 }
  0x33   : > { %2010 = shalt.err (!%p2007_p6)
}
  0x34   : > { %s2011_s12 = scalar_lea.vmem %s2308_s19, 128  ;;  %s2150_s18 = smov [#allocation5]  }
  0x35   : > { %p2012_p8 = scmp.ne.s32.totalorder %s2308_s19, %s2011_s12  ;;  %s2016_s22 = sshll.u32 %s2150_s18, 4  ;;  %s2017_s22 = int_to_ptr.vmem [resolvable:$false] %s2016_s22 }
  0x36   : > { %s2018_s10 = scalar_lea.vmem %s2017_s22, 256  ;;  %p2019_p12 = scmp.lt.s32.totalorder %s2308_s19, %s2017_s22 }
  0x37   : > { %p2014_p10 = pnand %p2012_p8, %p1998_p9  ;;  %p2020_p3 = scmp.lt.s32.totalorder %s2018_s10, %s2011_s12 }
  0x39   : > { %p2015_p2 = pneg %p2014_p10  ;;  %p2021_p13 = por %p2020_p3, %p2019_p12 }
  0x3b   : > { %p2022_p0 = pnand %p2021_p13, %p2015_p2 }
  0x3d   : > { %2025 = shalt.err (!%p2022_p0)
}
  0x3e   : > { %1859 = dma.hbm_to_vmem [thread:$0]  (!%p2312_p4), %s2306_s7, 128, %s2308_s19, %s269_s9  }
  0x3f   : > { %p2628_p5 = scmp.lt.s32.totalorder %s2148_s11, 5  ;;  %p2629_p6 = scmp.ge.s32.totalorder %s2148_s11, 1 }
  0x41   : > { %p285_p9 = pnand %p2629_p6, %p2628_p5 }
  0x42   : > { %s290_s21 = sand.u32 (!%p285_p9), 1, %s2124_s28  }
  0x43   : > { %288 = sbr.rel (%p285_p9) target bundleno = 1862 (0x746), region = 48  ;;  %s2348_s17 = sshll.u32 (!%p285_p9), %s290_s21, 3 }
  0x44   : > { %s291_s16 = scalar_lea.sflag (!%p285_p9), [#allocation6], %s290_s21 }
  0x4a   : > { %2099 = dma.done.wait (%p2276_p7), %s291_s16, 128  }
  0x4b   : > { %2101 = vsyncadd (%p2276_p7), %s291_s16, 4294967168  ;;  %s2611_s7 = sand.u32 1, %s2112_s25   ;;  %s2357_s19 = sshll.u32 %s2132_s30, 1 }
  0x4c   : > { %s1638_s13 = sshll.u32 %s2611_s7, 4  ;;  %p335_p12 = scmp.lt.s32.totalorder %s2136_s8, 1 }
  0x4d   : > { %p337_p2 = scmp.lt.s32.totalorder %s2357_s19, 3  ;;  %s2370_s1 = scalar_lea.vmem [#allocation8], %s1638_s13 }
  0x4e   : > { %s336_s9 = scalar_select %p335_p12, %s2136_s8, 1 }
  0x4f   : > { %s338_s18 = scalar_select %p337_p2, %s2357_s19, 3 }
  0x50   : > { %s1640_s22 = sshll.u32 %s336_s9, 2  ;;  %p1642_p7 = scmp.ne.s32.totalorder %s2132_s30, 0 }
  0x51   : > { %s340_s10 = sadd.s32 %s1640_s22, %s338_s18  ;;  %v350_v0 = vld [vmem:[%s2599_s3] sm:$0xff] (!%p1642_p7)  ;;  %v351_v1 = vld [vmem:[%s2599_s3 + $0x8] sm:$0xff] (!%p1642_p7)  ;;  %v2151_v3 = vmov (!%p1642_p7), 0.0|0.0   ;;  %v352_v6 = vld [vmem:[%s2599_s3 + $0x10] sm:$0xff] (!%p1642_p7)  ;;  %vm2152_vm0 = vmmov (!%p1642_p7), 0   ;;  %v2153_v11 = vmov (!%p1642_p7), 0.0  }
  0x52   : > { %s1641_s20 = sshll.u32 %s340_s10, 3  ;;  %348 = sbr.rel (%p1642_p7) target bundleno = 309 (0x135), region = 56  ;;  %v432_v2 = vld [vmem:[%s2600_s4] sm:$0xff] (!%p1642_p7)  ;;  %1818 = vmatprep.subr.bf16.mxu0 (!%p1642_p7), %v2151_v3  ;;  %1827 = vmatprep.subr.bf16.mxu1 (!%p1642_p7), %v2151_v3  ;;  %v1819_v4 = vpack.c.bf16 (!%p1642_p7), %v351_v1, %v350_v0  ;;  %v433_v5 = vld [vmem:[%s2600_s4 + $0x8] sm:$0xff] (!%p1642_p7)  ;;  %v353_v7 = vld [vmem:[%s2599_s3 + $0x18] sm:$0xff] (!%p1642_p7)  ;;  %vm356_vm1 = vcmask (!%p1642_p7), 392192  }
  0x53   : > { %s2368_s12 = scalar_lea.vmem %s2596_s0, %s1641_s20  ;;  %v1828_v8 = vpack.c.bf16 (!%p1642_p7), %v433_v5, %v432_v2  ;;  %v434_v9 = vld [vmem:[%s2600_s4 + $0x10] sm:$0xff] (!%p1642_p7)  ;;  %v435_v10 = vld [vmem:[%s2600_s4 + $0x18] sm:$0xff] (!%p1642_p7)  ;;  %1738 = vmatprep.mubr.msk.f32.mxu0 (!%p1642_p7), %vm2152_vm0, %v2153_v11  ;;  %1753 = vmatprep.mubr.msk.f32.mxu1 (!%p1642_p7), %vm2152_vm0, %v2153_v11  ;;  %v1822_v12 = vpack.c.bf16 (!%p1642_p7), %v353_v7, %v352_v6  ;;  %v354_v14 = vld [vmem:[%s2599_s3 + $0x20] sm:$0xff] (!%p1642_p7)  ;;  %s2630_s27 = scalar_lea.vmem (!%p1642_p7), [#allocation5], %s2348_s17  ;;  %vm430_vm2 = vcmask (!%p1642_p7), 261120  }
  0x54   : > { %1820 = vmatpush3.bf16.msra.mxu0 (!%p1642_p7), %v1819_v4  ;;  %v1831_v13 = vpack.c.bf16 (!%p1642_p7), %v435_v10, %v434_v9  ;;  %v355_v15 = vld [vmem:[%s2599_s3 + $0x28] sm:$0xff] (!%p1642_p7)  ;;  %v436_v16 = vld [vmem:[%s2600_s4 + $0x20] sm:$0xff] (!%p1642_p7) }
  0x55   : > { %1829 = vmatpush3.bf16.msra.mxu1 (!%p1642_p7), %v1828_v8  ;;  %1821 = vmatprep.subr.bf16.mxu0 (!%p1642_p7), %v2151_v3  ;;  %v437_v17 = vld [vmem:[%s2600_s4 + $0x28] sm:$0xff] (!%p1642_p7)  ;;  %v1825_v18 = vpack.c.bf16 (!%p1642_p7), %v355_v15, %v354_v14 }
  0x56   : > { %1830 = vmatprep.subr.bf16.mxu1 (!%p1642_p7), %v2151_v3  ;;  %v1834_v19 = vpack.c.bf16 (!%p1642_p7), %v437_v17, %v436_v16  ;;  %v349_v20 = vld [vmem:[%s2630_s27] sm:$0xff] (!%p1642_p7) }
  0x58   : > { %1823 = vmatpush3.bf16.msra.mxu0 (!%p1642_p7), %v1822_v12 }
  0x59   : > { %1832 = vmatpush3.bf16.msra.mxu1 %v1831_v13  ;;  %1824 = vmatprep.subr.bf16.mxu0 %v2151_v3 }
  0x5a   : > { %1833 = vmatprep.subr.bf16.mxu1 %v2151_v3 }
  0x5c   : > { %1826 = vmatpush3.bf16.msra.mxu0 %v1825_v18 }
  0x5d   : > { %1835 = vmatpush3.bf16.msra.mxu1 %v1834_v19 }
  0x5f   : > { %1739 = vmatmul.mubr.msk.f32.vlgmr.msra.gmra.mrb[0].mxu0 %vm356_vm1, %v349_v20 }
  0x60   : > { %1754 = vmatmul.mubr.msk.f32.vlgmr.msra.gmra.mrb[0].mxu1 %vm356_vm1, %v349_v20 }
 0x132   : > { %v426_v21 = vpop.f32.mrb[0].mxu0 }
 0x133   : > { %431 = vst.msk [vmem:[#allocation2] sm:$0xff] %vm430_vm2, %v426_v21  ;;  %v504_v22 = vpop.f32.mrb[0].mxu1  ;;  %v1740_v23 = vpop.f32.mrb[1].mxu0 }
 0x134   : > { %508 = vst.msk [vmem:[#allocation3] sm:$0xff] %vm430_vm2, %v504_v22  ;;  %v1755_v24 = vpop.f32.mrb[1].mxu1 }
 0x135 PF: > { %v511_v25 = vld [vmem:[%s2598_s2] sm:$0xff]  ;;  %v512_v26 = vld [vmem:[%s2598_s2 + $0x8] sm:$0xff]  ;;  %v513_v27 = vld [vmem:[%s2598_s2 + $0x10] sm:$0xff]  ;;  %vm515_vm3 = vcmask 261120   ;;  %vm599_vm4 = vcmask 64512   ;;  %s2154_s13 = smov 120  }
 0x136   : > { %v1836_v28 = vpack.c.bf16 %v512_v26, %v511_v25  ;;  %v514_v29 = vld [vmem:[%s2598_s2 + $0x18] sm:$0xff]  ;;  %v509_v30 = vld [vmem:[%s2368_s12] sm:$0xff]  ;;  %v510_v33 = vld [vmem:[%s2368_s12 + $0x8] sm:$0xff]  ;;  %s2155_s22 = smov 112   ;;  %s2156_s30 = smov 104   ;;  %vm994_vm5 = vcmask 130112  }
 0x137   : > { %v1840_v31 = vpack.c.bf16 %v514_v29, %v513_v27  ;;  %1764 = vmatprep.mubr.msk.f32.mxu0 %vm515_vm3, %v509_v30  ;;  %s2157_s21 = smov 8   ;;  %s2158_s16 = smov 16   ;;  %vm1202_vm6 = vcmask 195712   ;;  %vm1410_vm7 = vcmask 261312  }
 0x138   : > { %1837 = vmatprep.subr.bf16.mxu0 %v1836_v28  ;;  %s2159_s9 = smov 24   ;;  %s1672_s18 = sshll.u32 %s2136_s8, 2 }
 0x139   : > { %1839 = vmatpush3.bf16.msra.mxu0 %v1836_v28  ;;  %s1525_s10 = sshll.u32 %s2370_s1, 4  ;;  %s2631_s28 = sld [smem:[#allocation19_spill]]  ;;  %s2526_s10 = int_to_ptr.vmem [resolvable:$true] %s1525_s10 }
 0x13a   : > { %v789_v32 = vld [vmem:[#allocation2] sm:$0xff]  ;;  %1841 = vmatprep.subr.bf16.mxu0 %v1840_v31  ;;  %s2633_s8 = sand.u32 1, %s2112_s25   ;;  %s2026_s17 = scalar_lea.vmem %s2526_s10, 256 }
 0x13b   : > { %796 = vrot.lane.b32.xlu1 %v789_v32, %s2154_s13  ;;  %1767 = vmatprep.subr.msk.mxu1 %vm599_vm4, %v789_v32  ;;  %v598_v47 = vld [vmem:[#allocation3] sm:$0xff]  ;;  %p2027_p4 = scmp.ne.s32.totalorder %s2526_s10, %s2026_s17  ;;  %p2634_p11 = scmp.ne.s32.totalorder %s2623_s23, 0 }
 0x13c   : > { %1768 = vmatpush3.xpose.msk.msra.mxu1 %vm599_vm4, %v789_v32 }
 0x13d   : > { %1843 = vmatpush3.bf16.msra.mxu0 %v1840_v31  ;;  %1772 = vmatprep.subr.mxu1 %v598_v47  ;;  %p2028_p1 = pnand %p2027_p4, %p2634_p11 }
 0x13f   : > { %s2632_s7 = smov %s2631_s28  ;;  %p2029_p8 = pneg %p2028_p1 }
 0x140   : > { %1765 = vmatmul.mubr.msk.f32.vlgmr.msra.gmra.mrb[0].mxu0 %vm515_vm3, %v510_v33 }
 0x1ad   : > { %v797_v36 = vpop.permute.xlu1 %796 }
 0x213   : > { %v1766_v34 = vpop.f32.mrb[0].mxu0 }
 0x214   : > { %v588_v35 = vpop.f32.mrb[1].mxu0 }
 0x215   : > { %791 = vrot.lane.b32.xlu1 %v588_v35, %s2154_s13  ;;  %1769 = vmatprep.mubr.msk.f32.mxu1 %vm599_vm4, %v588_v35 }
 0x216   : > { %1770 = vmatmul.mubr.msk.f32.vlgmr.msra.gmra.mrb[0].mxu1 %vm599_vm4, %v1766_v34 }
 0x217   : > { %1773 = vmatpush3.msra.mxu1 %v598_v47 }
 0x218   : > { %1777 = vmatprep.subr.msk.mxu1 %vm599_vm4, %v797_v36 }
 0x219   : > { %1004 = vrot.lane.b32.xlu1 %v789_v32, %s2155_s22 }
 0x21d   : > { %999 = vrot.lane.b32.xlu1 %v588_v35, %s2155_s22 }
 0x221   : > { %1001 = vrot.lane.b32.xlu1 %v1766_v34, %s2155_s22 }
 0x225   : > { %1212 = vrot.lane.b32.xlu1 %v789_v32, %s2156_s30 }
 0x229   : > { %1207 = vrot.lane.b32.xlu1 %v588_v35, %s2156_s30 }
 0x22d   : > { %1209 = vrot.lane.b32.xlu1 %v1766_v34, %s2156_s30 }
 0x287   : > { %v792_v37 = vpop.permute.xlu1 %791 }
 0x28b   : > { %v1005_v38 = vpop.permute.xlu1 %1004 }
 0x28c   : > { %1787 = vmatprep.subr.msk.mxu0 %vm599_vm4, %v1005_v38 }
 0x28d   : > { %1788 = vmatpush3.xpose.msk.msra.mxu0 %vm599_vm4, %v1005_v38 }
 0x28f   : > { %v1000_v39 = vpop.permute.xlu1 %999 }
 0x290   : > { %1789 = vmatprep.mubr.msk.f32.mxu0 %vm599_vm4, %v1000_v39 }
 0x293   : > { %v1002_v40 = vpop.permute.xlu1 %1001 }
 0x294   : > { %1790 = vmatmul.mubr.msk.f32.vlgmr.msra.gmra.mrb[2].mxu0 %vm599_vm4, %v1002_v40 }
 0x297   : > { %v1213_v41 = vpop.permute.xlu1 %1212 }
 0x298   : > { %1797 = vmatprep.subr.msk.mxu0 %vm599_vm4, %v1213_v41 }
 0x299   : > { %1798 = vmatpush3.xpose.msk.msra.mxu0 %vm599_vm4, %v1213_v41 }
 0x29b   : > { %v1208_v42 = vpop.permute.xlu1 %1207 }
 0x29c   : > { %1799 = vmatprep.mubr.msk.f32.mxu0 %vm599_vm4, %v1208_v42 }
 0x29f   : > { %v1210_v43 = vpop.permute.xlu1 %1209 }
 0x2a0   : > { %1800 = vmatmul.mubr.msk.f32.vlgmr.msra.gmra.mrb[4].mxu0 %vm599_vm4, %v1210_v43 }
 0x2e9   : > { %v1771_v44 = vpop.f32.mrb[0].mxu1 }
 0x2ea   : > { %v675_v45 = vpop.f32.mrb[1].mxu1  ;;  %v687_v48 = vsel %vm599_vm4, %v1771_v44, -inf }
 0x2eb   : > { %v684_v46 = vsel %vm599_vm4, %v675_v45, -inf }
 0x2ec   : > { %685 = vmax.xlane.f32.xlu0 %v684_v46 }
 0x2f0   : > { %688 = vmax.xlane.f32.xlu0 %v687_v48 }
 0x306   : > { %793 = vrot.lane.b32.xlu0 %v1766_v34, %s2154_s13 }
 0x367   : > { %v1791_v49 = vpop.f32.mrb[2].mxu0 }
 0x368   : > { %v1078_v50 = vpop.f32.mrb[3].mxu0  ;;  %v1090_v51 = vsel %vm599_vm4, %v1791_v49, -inf }
 0x369   : > { %1091 = vmax.xlane.f32.xlu0 %v1090_v51  ;;  %v1087_v52 = vsel %vm599_vm4, %v1078_v50, -inf }
 0x36d   : > { %1088 = vmax.xlane.f32.xlu0 %v1087_v52 }
 0x373   : > { %v2453_v53 = vpop.f32.mrb[4].mxu0 }
 0x374   : > { %v1286_v54 = vpop.f32.mrb[5].mxu0  ;;  %v1298_v7 = vsel %vm599_vm4, %v2453_v53, -inf }
 0x375   : > { %v1295_v55 = vsel %vm599_vm4, %v1286_v54, -inf }
 0x376   : > { %1296 = vmax.xlane.f32.xlu1 %v1295_v55  ;;  %v1415_v55 = vld [vmem:[%s2601_s5] sm:$0xff] }
 0x379   : > { %v686_v56 = vpop.xlane.xlu0 %685 }
 0x37a   : > { %v690_v57 = vsub.f32 %v675_v45, %v686_v56  ;;  %v1416_v56 = vld [vmem:[%s2601_s5 + $0x8] sm:$0xff] }
 0x37c   : > { %v692_v58 = vmul.f32 1.442695, %v690_v57  ;;  %v1844_v57 = vpack.c.bf16 %v1416_v56, %v1415_v55 }
 0x37d   : > { %v689_v59 = vpop.xlane.xlu0 %688 }
 0x37e   : > { %1964 = vpow2.f32 %v692_v58  ;;  %v691_v60 = vsub.f32 %v1771_v44, %v689_v59  ;;  %v1417_v58 = vld [vmem:[%s2601_s5 + $0x10] sm:$0xff]  ;;  %v1418_v59 = vld [vmem:[%s2601_s5 + $0x18] sm:$0xff]  ;;  %1845 = vmatprep.subr.bf16.mxu0 %v1844_v57 }
 0x37f   : > { %1847 = vmatpush3.bf16.msra.mxu0 %v1844_v57 }
 0x380   : > { %v694_v61 = vmul.f32 1.442695, %v691_v60 }
 0x381   : > { %v794_v0 = vpop.permute.xlu0 %793 }
 0x382   : > { %1966 = vpow2.f32 %v694_v61 }
 0x388   : > { %v2456_v62 = vpop.eup %1964 }
 0x389   : > { %1774 = vmatprep.mubr.msk.f32.mxu1 %vm599_vm4, %v2456_v62  ;;  %v696_v41 = vsel %vm599_vm4, %v2456_v62, 0.0  ;;  %v1848_v62 = vpack.c.bf16 %v1418_v59, %v1417_v58 }
 0x38b   : > { %1849 = vmatprep.subr.bf16.mxu0 %v1848_v62 }
 0x38c   : > { %v2460_v63 = vpop.eup %1966  ;;  %1851 = vmatpush3.bf16.msra.mxu0 %v1848_v62 }
 0x38d   : > { %1775 = vmatmul.mubr.msk.f32.vlgmr.msra.gmra.mrb[2].mxu1 %vm599_vm4, %v2460_v63  ;;  %v699_v42 = vsel %vm599_vm4, %v2460_v63, 0.0 }
 0x38e   : > { %1778 = vmatpush3.xpose.msk.msra.mxu1 %vm599_vm4, %v797_v36  ;;  %1779 = vmatprep.mubr.msk.f32.mxu1 %vm599_vm4, %v792_v37 }
 0x391   : > { %1780 = vmatmul.mubr.msk.f32.vlgmr.msra.gmra.mrb[4].mxu1 %vm599_vm4, %v794_v0 }
 0x3f6   : > { %v1092_v8 = vpop.xlane.xlu0 %1091 }
 0x3f7   : > { %v1094_v10 = vsub.f32 %v1791_v49, %v1092_v8 }
 0x3f9   : > { %v1097_v12 = vmul.f32 1.442695, %v1094_v10 }
 0x3fa   : > { %v1089_v9 = vpop.xlane.xlu0 %1088 }
 0x3fb   : > { %v1093_v11 = vsub.f32 %v1078_v50, %v1089_v9  ;;  %1968 = vpow2.f32 %v1097_v12 }
 0x3fd   : > { %v1095_v13 = vmul.f32 1.442695, %v1093_v11 }
 0x3ff   : > { %1970 = vpow2.f32 %v1095_v13 }
 0x403   : > { %v1297_v18 = vpop.xlane.xlu1 %1296 }
 0x404   : > { %v1301_v19 = vsub.f32 %v1286_v54, %v1297_v18 }
 0x405   : > { %v1969_v14 = vpop.eup %1968 }
 0x406   : > { %v1102_v16 = vsel %vm599_vm4, %v1969_v14, 0.0  ;;  %v1303_v24 = vmul.f32 1.442695, %v1301_v19 }
 0x409   : > { %v1971_v15 = vpop.eup %1970 }
 0x40a   : > { %v1099_v17 = vsel %vm599_vm4, %v1971_v15, 0.0 }
 0x460   : > { %v2467_v1 = vpop.f32.mrb[2].mxu1 }
 0x461   : > { %v2469_v2 = vpop.f32.mrb[3].mxu1 }
 0x464   : > { %v1781_v3 = vpop.f32.mrb[4].mxu1 }
 0x465   : > { %v870_v4 = vpop.f32.mrb[5].mxu1  ;;  %v882_v5 = vsel %vm599_vm4, %v1781_v3, -inf }
 0x466   : > { %883 = vmax.xlane.f32.xlu1 %v882_v5  ;;  %v879_v6 = vsel %vm599_vm4, %v870_v4, -inf }
 0x467   : > { %880 = vmax.xlane.f32.xlu0 %v879_v6 }
 0x46b   : > { %1299 = vmax.xlane.f32.xlu0 %v1298_v7 }
 0x477   : > { %898 = vrot.lane.b32.xlu1 %v598_v47, %s2154_s13  ;;  %s1522_s13 = sadd.s32 %s1672_s18, %s2357_s19  ;;  %s2534_s19 = scalar_lea.sflag [#allocation7], %s2633_s8 }
 0x478   : > { %s1673_s12 = sshll.u32 %s1522_s13, 7 }
 0x479   : > { %s2524_s20 = scalar_lea.hbm %s2631_s28, %s1673_s12 }
 0x47b   : > { %1314 = vrot.lane.b32.xlu1 %v598_v47, %s2156_s30 }
 0x481   : > { %1106 = vrot.lane.b32.xlu0 %v598_v47, %s2155_s22 }
 0x49f   : > { %1103 = vadd.xlane.f32.xlu1 %v1102_v16 }
 0x4a0   : > { %1100 = vadd.xlane.f32.xlu0 %v1099_v17 }
 0x4f3   : > { %v884_v20 = vpop.xlane.xlu1 %883 }
 0x4f4   : > { %v886_v21 = vsub.f32 %v1781_v3, %v884_v20  ;;  %v881_v22 = vpop.xlane.xlu0 %880 }
 0x4f5   : > { %v885_v23 = vsub.f32 %v870_v4, %v881_v22 }
 0x4f6   : > { %v889_v25 = vmul.f32 1.442695, %v886_v21 }
 0x4f7   : > { %v887_v26 = vmul.f32 1.442695, %v885_v23  ;;  %v899_v27 = vpop.permute.xlu1 %898  ;;  %v1667_v23 = vld [vmem:[%s2602_s6] ss:$0 sm:$0xff] }
 0x4f8   : > { %1972 = vpow2.f32 %v889_v25  ;;  %v1300_v28 = vpop.xlane.xlu0 %1299  ;;  %1782 = vmatprep.subr.mxu1 %v899_v27 }
 0x4f9   : > { %1974 = vpow2.f32 %v887_v26  ;;  %v1302_v29 = vsub.f32 %v2453_v53, %v1300_v28  ;;  %1783 = vmatpush3.msra.mxu1 %v899_v27 }
 0x4fa   : > { %1976 = vpow2.f32 %v1303_v24 }
 0x4fb   : > { %v1305_v30 = vmul.f32 1.442695, %v1302_v29  ;;  %v1315_v37 = vpop.permute.xlu1 %1314 }
 0x4fc   : > { %v1107_v31 = vpop.permute.xlu0 %1106 }
 0x4fd   : > { %1978 = vpow2.f32 %v1305_v30  ;;  %1792 = vmatprep.subr.mxu1 %v1107_v31 }
 0x502   : > { %v1973_v32 = vpop.eup %1972 }
 0x503   : > { %v1975_v33 = vpop.eup %1974  ;;  %v894_v34 = vsel %vm599_vm4, %v1973_v32, 0.0 }
 0x504   : > { %v1977_v35 = vpop.eup %1976  ;;  %895 = vadd.xlane.f32.xlu0 %v894_v34  ;;  %1784 = vmatprep.mubr.msk.f32.mxu1 %vm599_vm4, %v1975_v33  ;;  %v891_v36 = vsel %vm599_vm4, %v1975_v33, 0.0 }
 0x505   : > { %1785 = vmatmul.mubr.msk.f32.vlgmr.msra.gmra.mrb[6].mxu1 %vm599_vm4, %v1973_v32  ;;  %892 = vadd.xlane.f32.xlu1 %v891_v36  ;;  %v1307_v39 = vsel %vm599_vm4, %v1977_v35, 0.0 }
 0x506   : > { %1793 = vmatpush3.msra.mxu1 %v1107_v31  ;;  %1794 = vmatprep.mubr.msk.f32.mxu1 %vm599_vm4, %v1971_v15 }
 0x507   : > { %v1979_v38 = vpop.eup %1978  ;;  %1802 = vmatprep.subr.mxu1 %v1315_v37 }
 0x508   : > { %1308 = vadd.xlane.f32.xlu0 %v1307_v39  ;;  %v1310_v40 = vsel %vm599_vm4, %v1979_v38, 0.0 }
 0x509   : > { %1311 = vadd.xlane.f32.xlu1 %v1310_v40  ;;  %1795 = vmatmul.mubr.msk.f32.vlgmr.msra.gmra.mrb[8].mxu1 %vm599_vm4, %v1969_v14 }
 0x50a   : > { %1803 = vmatpush3.msra.mxu1 %v1315_v37  ;;  %1804 = vmatprep.mubr.msk.f32.mxu1 %vm599_vm4, %v1977_v35 }
 0x50c   : > { %697 = vadd.xlane.f32.xlu0 %v696_v41 }
 0x50d   : > { %700 = vadd.xlane.f32.xlu1 %v699_v42  ;;  %1805 = vmatmul.mubr.msk.f32.vlgmr.msra.gmra.mrb[10].mxu1 %vm599_vm4, %v1979_v38 }
 0x52c   : > { %v1104_v44 = vpop.xlane.xlu1 %1103 }
 0x52d   : > { %v1101_v43 = vpop.xlane.xlu0 %1100 }
 0x591   : > { %v896_v45 = vpop.xlane.xlu0 %895 }
 0x592   : > { %v893_v46 = vpop.xlane.xlu1 %892 }
 0x595   : > { %v1309_v47 = vpop.xlane.xlu0 %1308 }
 0x596   : > { %v1312_v48 = vpop.xlane.xlu1 %1311 }
 0x599   : > { %v698_v49 = vpop.xlane.xlu0 %697 }
 0x59a   : > { %1980 = vrcp.f32 %v698_v49  ;;  %v701_v50 = vpop.xlane.xlu1 %700 }
 0x59b   : > { %1982 = vrcp.f32 %v701_v50 }
 0x59c   : > { %1984 = vrcp.f32 %v896_v45 }
 0x59d   : > { %1986 = vrcp.f32 %v893_v46 }
 0x59e   : > { %1988 = vrcp.f32 %v1104_v44 }
 0x59f   : > { %1990 = vrcp.f32 %v1101_v43 }
 0x5a0   : > { %1992 = vrcp.f32 %v1312_v48 }
 0x5a1   : > { %1994 = vrcp.f32 %v1309_v47 }
 0x5a4   : > { %v1981_v51 = vpop.eup %1980 }
 0x5a5   : > { %v1983_v52 = vpop.eup %1982  ;;  %v785_v53 = vmul.f32 %v1981_v51, %v2469_v2 }
 0x5a6   : > { %v786_v54 = vmul.f32 %v1983_v52, %v2467_v1  ;;  %v1985_v60 = vpop.eup %1984 }
 0x5a7   : > { %787 = vst.msk [vmem:[#allocation4] sm:$0xff] %vm599_vm4, %v785_v53  ;;  %v1987_v63 = vpop.eup %1986 }
 0x5a8   : > { %788 = vst.msk [vmem:[#allocation4 + $0x8] sm:$0xff] %vm599_vm4, %v786_v54  ;;  %v1989_v3 = vpop.eup %1988 }
 0x5a9   : > { %v1991_v5 = vpop.eup %1990 }
 0x5aa   : > { %v1993_v9 = vpop.eup %1992 }
 0x5ab   : > { %v1995_v11 = vpop.eup %1994 }
 0x5d8   : > { %v1786_v61 = vpop.f32.mrb[6].mxu1 }
 0x5d9   : > { %v985_v0 = vmul.f32 %v1985_v60, %v1786_v61  ;;  %v973_v1 = vpop.f32.mrb[7].mxu1 }
 0x5da   : > { %v984_v2 = vmul.f32 %v1987_v63, %v973_v1 }
 0x5db   : > { %990 = vrot.lane.b32.xlu1 %v985_v0, %s2157_s21 }
 0x5dc   : > { %988 = vrot.lane.b32.xlu0 %v984_v2, %s2157_s21  ;;  %v1796_v4 = vpop.f32.mrb[8].mxu1 }
 0x5dd   : > { %v1193_v6 = vmul.f32 %v1989_v3, %v1796_v4  ;;  %v1181_v7 = vpop.f32.mrb[9].mxu1 }
 0x5de   : > { %v1192_v8 = vmul.f32 %v1991_v5, %v1181_v7 }
 0x5e0   : > { %1198 = vrot.lane.b32.xlu0 %v1193_v6, %s2158_s16  ;;  %v1806_v10 = vpop.f32.mrb[10].mxu1  ;;  %1196 = vrot.lane.b32.xlu1 %v1192_v8, %s2158_s16  ;;  %s2160_s16 = smov [#allocation8]  }
 0x5e1   : > { %v1401_v12 = vmul.f32 %v1993_v9, %v1806_v10  ;;  %v1389_v13 = vpop.f32.mrb[11].mxu1 }
 0x5e2   : > { %v1400_v14 = vmul.f32 %v1995_v11, %v1389_v13 }
 0x5e4   : > { %1406 = vrot.lane.b32.xlu0 %v1401_v12, %s2159_s9  ;;  %1404 = vrot.lane.b32.xlu1 %v1400_v14, %s2159_s9  ;;  %s2030_s9 = sshll.u32 %s2160_s16, 4  ;;  %s2031_s9 = int_to_ptr.vmem [resolvable:$false] %s2030_s9 }
 0x5e5   : > { %s2032_s18 = scalar_lea.vmem %s2031_s9, 512  ;;  %p2033_p10 = scmp.lt.s32.totalorder %s2526_s10, %s2031_s9 }
 0x5e6   : > { %p2034_p3 = scmp.lt.s32.totalorder %s2032_s18, %s2026_s17 }
 0x5e8   : > { %p2035_p13 = por %p2034_p3, %p2033_p10 }
 0x5ea   : > { %p2036_p0 = pnand %p2035_p13, %p2029_p8 }
 0x64d   : > { %v991_v15 = vpop.permute.xlu1 %990 }
 0x64e   : > { %996 = vst.msk [vmem:[#allocation4 + $0x8] sm:$0xff] %vm994_vm5, %v991_v15  ;;  %v989_v16 = vpop.permute.xlu0 %988 }
 0x64f   : > { %995 = vst.msk [vmem:[#allocation4] sm:$0xff] %vm994_vm5, %v989_v16 }
 0x652   : > { %v1197_v17 = vpop.permute.xlu1 %1196  ;;  %v1199_v18 = vpop.permute.xlu0 %1198 }
 0x653   : > { %1203 = vst.msk [vmem:[#allocation4] sm:$0xff] %vm1202_vm6, %v1197_v17  ;;  %1204 = vst.msk [vmem:[#allocation4 + $0x8] sm:$0xff] %vm1202_vm6, %v1199_v18 }
 0x656   : > { %v1405_v19 = vpop.permute.xlu1 %1404  ;;  %v1407_v20 = vpop.permute.xlu0 %1406 }
 0x657   : > { %1411 = vst.msk [vmem:[#allocation4] sm:$0xff] %vm1410_vm7, %v1405_v19  ;;  %1412 = vst.msk [vmem:[#allocation4 + $0x8] sm:$0xff] %vm1410_vm7, %v1407_v20 }
 0x65e   : > { %v1413_v21 = vld [vmem:[#allocation4] sm:$0xff]  ;;  %v1414_v22 = vld [vmem:[#allocation4 + $0x8] sm:$0xff] }
 0x65f   : > { %1815 = vmatprep.mubr.msk.f32.mxu0 %vm515_vm3, %v1413_v21 }
 0x660   : > { %1816 = vmatmul.mubr.msk.f32.vlgmr.msra.gmra.mrb[6].mxu0 %vm515_vm3, %v1414_v22 }
 0x733   : > { %v1817_v24 = vpop.f32.mrb[6].mxu0 }
 0x734   : > { %v1504_v25 = vadd.f32 %v1817_v24, %v1667_v23  ;;  %v1498_v26 = vpop.f32.mrb[7].mxu0 }
 0x735   : > { %v1499_v27 = vadd.f32 %v1667_v23, %v1498_v26 }
 0x736   : > { %1508 = vst.msk [vmem:[%s2370_s1 + $0x8] sm:$0xff] %vm515_vm3, %v1504_v25 }
 0x737   : > { %1507 = vst.msk [vmem:[%s2370_s1] sm:$0xff] %vm515_vm3, %v1499_v27 }
 0x738   : > { %2039 = shalt.err (!%p2036_p0)
}
 0x739   : > { %s2040_s1 = scalar_lea.hbm %s2524_s20, 256  ;;  %s2044_s30 = scalar_lea.hbm %s2632_s7, 1024 }
 0x73a   : > { %p2041_p5 = scmp.ne.s32.totalorder %s2524_s20, %s2040_s1  ;;  %p2045_p12 = scmp.lt.u32.totalorder %s2524_s20, %s2632_s7 }
 0x73b   : > { %p2046_p2 = scmp.lt.u32.totalorder %s2044_s30, %s2040_s1  ;;  %p2048_p4 = scmp.lt.u32.totalorder %s2040_s1, %s2524_s20 }
 0x73c   : > { %p2042_p6 = pnand %p2041_p5, %p2634_p11 }
 0x73d   : > { %p2047_p7 = por %p2046_p2, %p2045_p12 }
 0x73e   : > { %p2043_p9 = pneg %p2042_p6 }
 0x73f   : > { %p2049_p1 = por %p2048_p4, %p2047_p7 }
 0x741   : > { %p2050_p8 = pnand %p2049_p1, %p2043_p9 }
 0x743   : > { %2053 = shalt.err (!%p2050_p8)
}
 0x744   : > { %s2161_s27 = smov 128  }
 0x745   : > { %1854 = dma.vmem_to_hbm [thread:$0]  (%p2634_p11), %s2526_s10, 256, %s2524_s20, %s2534_s19, %s2161_s27, %s2161_s27, %s2157_s21  }
 0x746 PF: > { %p1865_p10 = scmp.ge.s32.totalorder %s2148_s11, 2  ;;  %s1540_s28 = sand.u32 1, %s2108_s24  }
 0x747   : > { %p2635_p3 = scmp.ne.s32.totalorder %s2625_s15, 0  ;;  %s1541_s8 = scalar_lea.sflag [#allocation7], %s1540_s28 }
 0x749   : > { %p1861_p13 = pnand %p1865_p10, %p2635_p3 }
 0x74b   : > { %2103 = dma.done.wait (!%p1861_p13), %s1541_s8, 256  }
 0x74c   : > { %2105 = vsyncadd (!%p1861_p13), %s1541_s8, 4294967040  ;;  %s23_s11 = sadd.s32 1, %s2148_s11   ;;  %s2636_s27 = sld [smem:[#allocation11_spill]] }
 0x74d   : > { %p20_p0 = scmp.ge.s32.totalorder %s23_s11, 6   ;;  %s2637_s28 = sld [smem:[#allocation12_spill]] }
 0x74e   : > { %s2638_s29 = sld [smem:[#allocation17_spill]]  ;;  %s2639_s30 = sld [smem:[#allocation13_spill]] }
 0x74f   : > { %s2640_s8 = sld [smem:[#allocation14_spill]]  ;;  %s2641_s9 = sld [smem:[#allocation15_spill]] }
 0x750   : > { %s2642_s10 = sld [smem:[#allocation16_spill]]  ;;  %s2643_s24 = smov %s2112_s25 }
 0x751   : > { %s2644_s25 = smov %s2116_s26  ;;  %s2645_s26 = smov %s2292_s14 }
 0x752   :  { %22 = sbr.rel (!%p20_p0) target bundleno = 12 (0xc), region = 100 }
 0x759   :  { %1546 = vsyncpa [#allocation6], 1 }
 0x75a   :  { %1548 = vsyncpa [#allocation6 + $0x1], 1 }
 0x75b   :  { %1549 = vsyncpa [#allocation7], 1 }
 0x75c   :  { %1551 = vsyncpa [#allocation7 + $0x1], 1 }

</bundles_post_ra>
